<compile_context>
chip_gen: v6e
topology: v6e:2x2x1
jax: 0.10.0
libtpu: 0.0.40
codegen_flags: <defaults>
</compile_context>

<pallas_src>
import functools

import jax
import jax.numpy as jnp
from jax.experimental import pallas as pl
from jax.experimental.pallas import tpu as pltpu

A = 50            # hidden width of the PINN
IN_DIM = 2        # (t, x)
OUT_DIM = 4
HPAD = 128        # hidden width padded to one lane tile
SUBTILES = 2      # independent batch sub-tiles interleaved inside the body


def _pinn_kernel(t_ref, x_ref,
                 w1_ref, b1_ref,
                 w2_ref, b2_ref,
                 w3_ref, b3_ref,
                 wo_ref, bo_ref,
                 o_ref,
                 *, subtiles):
    tm = t_ref.shape[0]
    sub = tm // subtiles

    # Grid-invariant operands: load once, reuse for every sub-tile.
    w1_t = w1_ref[0:1, :]          # (1, HPAD) weight row multiplying t
    w1_x = w1_ref[1:2, :]          # (1, HPAD) weight row multiplying x
    b1 = b1_ref[...]
    w2 = w2_ref[...]
    b2 = b2_ref[...]
    w3 = w3_ref[...]
    b3 = b3_ref[...]
    wo = wo_ref[...]
    bo = bo_ref[...]
    mxu_dtype = w2.dtype           # f32 by default, bf16 on the opt-in path

    # Statically-unrolled independent sub-tiles so the MXU matmuls of one
    # sub-tile can co-issue with the EUP tanh of the other.
    for s in range(subtiles):
        lo, hi = s * sub, (s + 1) * sub
        t_col = t_ref[lo:hi, :]                            # (sub, 1)
        x_col = x_ref[lo:hi, :]                            # (sub, 1)
        # Layer 1: K=2 contraction as broadcast FMAs on the VPU (no MXU pass).
        h = jnp.tanh(t_col * w1_t + x_col * w1_x + b1)     # (sub, HPAD)
        # Layers 2 & 3: MXU matmuls (f32 accumulation) + EUP tanh.
        h = jnp.tanh(jnp.dot(h.astype(mxu_dtype), w2,
                             preferred_element_type=jnp.float32) + b2)
        h = jnp.tanh(jnp.dot(h.astype(mxu_dtype), w3,
                             preferred_element_type=jnp.float32) + b3)
        # Output layer. Hidden layers 4-8 of PINN_Net never feed the returned
        # output and are intentionally not evaluated.
        out = jnp.dot(h.astype(mxu_dtype), wo,
                      preferred_element_type=jnp.float32) + bo
        # Store only the 4 real output lanes into the narrow output block.
        o_ref[lo:hi, :] = out[:, :OUT_DIM]


def _round_up(x, m):
    return ((x + m - 1) // m) * m


def _num_tensorcores():
    """Best-effort TensorCore count per chip (targets of 'parallel' grid axes)."""
    try:
        kind = jax.devices()[0].device_kind.lower()
    except Exception:
        return 1
    if "lite" in kind or "v5e" in kind or "v6e" in kind:
        return 1                       # single-TC chips
    for tag in ("v4", "v5p", "v7"):    # megacore / dual-TC chips
        if tag in kind:
            return 2
    return 1


def _pick_tm(n, num_cores, max_tm):
    """Generation-aware batch tile size.

    1-TC chips (v5e/v6e): one tile as big as possible (no >=2-step cap), since
    per-grid-step overhead dominates at small N.
    2-TC chips (v4/v5p/v7x): keep >= 2 steps and prefer an even step count so
    the 'parallel' axis splits evenly across both cores.
    Tiles are kept <= N (when N >= 16) so only standard partial edge blocks
    occur, and are multiples of 8*SUBTILES so sub-tile slices stay sublane
    aligned.
    """
    align = 8 * SUBTILES
    max_tm = max(align, _round_up(max_tm, align))
    if num_cores <= 1:
        return max(align, (min(n, max_tm) // align) * align)
    min_tm = 128
    tm = max_tm
    while tm > min_tm and pl.cdiv(n, tm) < num_cores:
        tm = max(min_tm, _round_up(tm // 2, align))
    # Prefer the largest tile whose step count splits evenly across the cores.
    cand = tm
    while cand >= min_tm:
        if pl.cdiv(n, cand) % num_cores == 0:
            return cand
        nxt = _round_up(cand // 2, align)
        if nxt >= cand:
            break
        cand = nxt
    return tm


def _pad2d(w, rows, cols, dtype):
    out = jnp.zeros((rows, cols), dtype=dtype)
    return out.at[: w.shape[0], : w.shape[1]].set(w.astype(dtype))


def _pad_bias(b, cols):
    out = jnp.zeros((1, cols), dtype=jnp.float32)
    return out.at[0, : b.shape[0]].set(b.astype(jnp.float32))


def pinn_forward(t, x, params, *, max_tm=2048, use_bf16=False):
    """t, x: float32 arrays of shape (N,) or (N, 1). Returns (N, 4)."""
    t = t.reshape(-1, 1).astype(jnp.float32)
    x = x.reshape(-1, 1).astype(jnp.float32)
    n = t.shape[0]

    num_cores = _num_tensorcores()
    tm = _pick_tm(n, num_cores, max_tm)
    assert tm % (8 * SUBTILES) == 0
    grid = (pl.cdiv(n, tm),)        # partial edge block is masked by Pallas

    (w1, b1), (w2, b2), (w3, b3) = params[0], params[1], params[2]
    wo, bo = params[-1]
    mxu_dtype = jnp.bfloat16 if use_bf16 else jnp.float32
    w1p = _pad2d(w1, IN_DIM, HPAD, jnp.float32)   # layer 1 runs on the VPU in f32
    w2p = _pad2d(w2, HPAD, HPAD, mxu_dtype)
    w3p = _pad2d(w3, HPAD, HPAD, mxu_dtype)
    wop = _pad2d(wo, HPAD, HPAD, mxu_dtype)
    b1p = _pad_bias(b1, HPAD)
    b2p = _pad_bias(b2, HPAD)
    b3p = _pad_bias(b3, HPAD)
    bop = _pad_bias(bo, HPAD)

    in_col = pl.BlockSpec((tm, 1), lambda i: (i, 0))          # narrow (N,1) inputs
    out_spec = pl.BlockSpec((tm, OUT_DIM), lambda i: (i, 0))  # narrow (N,4) output
    w1_spec = pl.BlockSpec((IN_DIM, HPAD), lambda i: (0, 0))
    w_spec = pl.BlockSpec((HPAD, HPAD), lambda i: (0, 0))
    b_spec = pl.BlockSpec((1, HPAD), lambda i: (0, 0))

    kernel = functools.partial(_pinn_kernel, subtiles=SUBTILES)
    out = pl.pallas_call(
        kernel,
        out_shape=jax.ShapeDtypeStruct((n, OUT_DIM), jnp.float32),
        grid_spec=pltpu.PrefetchScalarGridSpec(
            num_scalar_prefetch=0,
            grid=grid,
            in_specs=[in_col, in_col,
                      w1_spec, b_spec,
                      w_spec, b_spec,
                      w_spec, b_spec,
                      w_spec, b_spec],
            out_specs=out_spec,
        ),
        compiler_params=pltpu.CompilerParams(
            dimension_semantics=("parallel",),
            # Explicit scoped-VMEM budget: comfortably covers the largest tile
            # (~10 MiB at tm=2048) on every generation, including v5e's small
            # default scoped limit and v7x's 64 MiB physical VMEM.
            vmem_limit_bytes=48 * 1024 * 1024,
        ),
    )(t, x, w1p, b1p, w2p, b2p, w3p, b3p, wop, bop)
    return out


def init_params(key):
    """Deterministic init mimicking torch.nn.Linear (uniform +-1/sqrt(fan_in)).
    Weights are stored transposed vs. PyTorch, i.e. shape (in, out).
    Layers: hidden1..hidden8, output (matching PINN_Net's 9 Linear layers)."""
    dims = [(IN_DIM, A)] + [(A, A)] * 7 + [(A, OUT_DIM)]
    params = []
    for fan_in, fan_out in dims:
        key, kw, kb = jax.random.split(key, 3)
        bound = 1.0 / jnp.sqrt(float(fan_in))
        w = jax.random.uniform(kw, (fan_in, fan_out), jnp.float32, -bound, bound)
        b = jax.random.uniform(kb, (fan_out,), jnp.float32, -bound, bound)
        params.append((w, b))
    return tuple(params)


def reference_forward(t, x, params):
    """Pure-JAX reference reproducing exactly what PINN_Net.forward returns:
    output = output_layer(tanh(L3(tanh(L2(tanh(L1(cat[t, x]))))))).
    Hidden layers 4-8 are dead code w.r.t. the returned value."""
    t = t.reshape(-1, 1)
    x = x.reshape(-1, 1)
    (w1, b1), (w2, b2), (w3, b3) = params[0], params[1], params[2]
    wo, bo = params[-1]
    hi = jax.lax.Precision.HIGHEST
    # Layer 1 expressed as the same broadcast FMA as the kernel; identical to
    # jnp.concatenate([t, x], 1) @ w1 + b1.
    h = jnp.tanh(t * w1[0:1, :] + x * w1[1:2, :] + b1)
    h = jnp.tanh(jnp.dot(h, w2, precision=hi) + b2)
    h3 = jnp.tanh(jnp.dot(h, w3, precision=hi) + b3)
    return jnp.dot(h3, wo, precision=hi) + bo


if __name__ == "__main__":
    key = jax.random.PRNGKey(0)
    kp, kt, kx = jax.random.split(key, 3)
    params = init_params(kp)

    # Small deterministic problem consistent with the module: N points of (t, x).
    N = 256
    t = jax.random.normal(kt, (N,), jnp.float32)
    x = jax.random.normal(kx, (N,), jnp.float32)

    out = jax.block_until_ready(pinn_forward(t, x, params))
    ref = reference_forward(t, x, params)
    assert out.shape == (N, OUT_DIM)
    err = float(jnp.max(jnp.abs(out - ref)))
    assert jnp.allclose(out, ref, atol=1e-4, rtol=1e-4), err

    # Ragged batch: exercises the Pallas-masked partial edge block
    # (no wrapper-side pad / slice).
    N2 = 200
    t2 = jax.random.normal(kt, (N2,), jnp.float32)
    x2 = jax.random.normal(kx, (N2,), jnp.float32)
    out2 = jax.block_until_ready(pinn_forward(t2, x2, params))
    ref2 = reference_forward(t2, x2, params)
    assert out2.shape == (N2, OUT_DIM)
    err2 = float(jnp.max(jnp.abs(out2 - ref2)))
    assert jnp.allclose(out2, ref2, atol=1e-4, rtol=1e-4), err2

    # Opt-in bf16 MXU path (faster matmuls; numerics differ from the f32 ref).
    out_bf = jax.block_until_ready(pinn_forward(t, x, params, use_bf16=True))
    err_bf = float(jnp.max(jnp.abs(out_bf - ref)))
    assert jnp.allclose(out_bf, ref, atol=5e-2, rtol=5e-2), err_bf

    print("KERNEL_OK")
</pallas_src>

<mosaic_0001>
module attributes {stable_mosaic.version = 11 : i64} {
  func.func @_pinn_kernel(%arg0: i32, %arg1: memref<256x1xf32, #tpu.memory_space<vmem>>, %arg2: memref<256x1xf32, #tpu.memory_space<vmem>>, %arg3: memref<2x128xf32, #tpu.memory_space<vmem>>, %arg4: memref<1x128xf32, #tpu.memory_space<vmem>>, %arg5: memref<128x128xf32, #tpu.memory_space<vmem>>, %arg6: memref<1x128xf32, #tpu.memory_space<vmem>>, %arg7: memref<128x128xf32, #tpu.memory_space<vmem>>, %arg8: memref<1x128xf32, #tpu.memory_space<vmem>>, %arg9: memref<128x128xf32, #tpu.memory_space<vmem>>, %arg10: memref<1x128xf32, #tpu.memory_space<vmem>>, %arg11: memref<256x4xf32, #tpu.memory_space<vmem>>) attributes {dimension_semantics = [#tpu.dimension_semantics<parallel>], iteration_bounds = array<i64: 1>, scalar_prefetch = 0 : i64, scratch_operands = 0 : i64, tpu.core_type = #tpu.core_type<tc>, window_params = [{transform_indices = @transform_0, window_bounds = array<i64: 256, 1>}, {transform_indices = @transform_1, window_bounds = array<i64: 256, 1>}, {pipeline_mode = #tpu.pipeline_mode<synchronous>, transform_indices = @transform_2, window_bounds = array<i64: 2, 128>}, {pipeline_mode = #tpu.pipeline_mode<synchronous>, transform_indices = @transform_3, window_bounds = array<i64: 1, 128>}, {pipeline_mode = #tpu.pipeline_mode<synchronous>, transform_indices = @transform_4, window_bounds = array<i64: 128, 128>}, {pipeline_mode = #tpu.pipeline_mode<synchronous>, transform_indices = @transform_5, window_bounds = array<i64: 1, 128>}, {pipeline_mode = #tpu.pipeline_mode<synchronous>, transform_indices = @transform_6, window_bounds = array<i64: 128, 128>}, {pipeline_mode = #tpu.pipeline_mode<synchronous>, transform_indices = @transform_7, window_bounds = array<i64: 1, 128>}, {pipeline_mode = #tpu.pipeline_mode<synchronous>, transform_indices = @transform_8, window_bounds = array<i64: 128, 128>}, {pipeline_mode = #tpu.pipeline_mode<synchronous>, transform_indices = @transform_9, window_bounds = array<i64: 1, 128>}, {transform_indices = @transform_10, window_bounds = array<i64: 256, 4>}]} {
    %c0 = arith.constant 0 : index
    %c0_0 = arith.constant 0 : index
    %0 = vector.load %arg3[%c0, %c0_0] : memref<2x128xf32, #tpu.memory_space<vmem>>, vector<1x128xf32>
    %c1 = arith.constant 1 : index
    %c0_1 = arith.constant 0 : index
    %1 = vector.load %arg3[%c1, %c0_1] : memref<2x128xf32, #tpu.memory_space<vmem>>, vector<1x128xf32>
    %c0_2 = arith.constant 0 : index
    %c0_3 = arith.constant 0 : index
    %2 = vector.load %arg4[%c0_2, %c0_3] : memref<1x128xf32, #tpu.memory_space<vmem>>, vector<1x128xf32>
    %c0_4 = arith.constant 0 : index
    %c0_5 = arith.constant 0 : index
    %3 = vector.load %arg5[%c0_4, %c0_5] : memref<128x128xf32, #tpu.memory_space<vmem>>, vector<128x128xf32>
    %c0_6 = arith.constant 0 : index
    %c0_7 = arith.constant 0 : index
    %4 = vector.load %arg6[%c0_6, %c0_7] : memref<1x128xf32, #tpu.memory_space<vmem>>, vector<1x128xf32>
    %c0_8 = arith.constant 0 : index
    %c0_9 = arith.constant 0 : index
    %5 = vector.load %arg7[%c0_8, %c0_9] : memref<128x128xf32, #tpu.memory_space<vmem>>, vector<128x128xf32>
    %c0_10 = arith.constant 0 : index
    %c0_11 = arith.constant 0 : index
    %6 = vector.load %arg8[%c0_10, %c0_11] : memref<1x128xf32, #tpu.memory_space<vmem>>, vector<1x128xf32>
    %c0_12 = arith.constant 0 : index
    %c0_13 = arith.constant 0 : index
    %7 = vector.load %arg9[%c0_12, %c0_13] : memref<128x128xf32, #tpu.memory_space<vmem>>, vector<128x128xf32>
    %c0_14 = arith.constant 0 : index
    %c0_15 = arith.constant 0 : index
    %8 = vector.load %arg10[%c0_14, %c0_15] : memref<1x128xf32, #tpu.memory_space<vmem>>, vector<1x128xf32>
    %c0_16 = arith.constant 0 : index
    %c0_17 = arith.constant 0 : index
    %9 = vector.load %arg1[%c0_16, %c0_17] : memref<256x1xf32, #tpu.memory_space<vmem>>, vector<128x1xf32>
    %c0_18 = arith.constant 0 : index
    %c0_19 = arith.constant 0 : index
    %10 = vector.load %arg2[%c0_18, %c0_19] : memref<256x1xf32, #tpu.memory_space<vmem>>, vector<128x1xf32>
    %11 = vector.broadcast %9 : vector<128x1xf32> to vector<128x128xf32>
    %12 = vector.broadcast %0 : vector<1x128xf32> to vector<128x128xf32>
    %13 = arith.mulf %11, %12 : vector<128x128xf32>
    %14 = vector.broadcast %10 : vector<128x1xf32> to vector<128x128xf32>
    %15 = vector.broadcast %1 : vector<1x128xf32> to vector<128x128xf32>
    %16 = arith.mulf %14, %15 : vector<128x128xf32>
    %17 = arith.addf %13, %16 : vector<128x128xf32>
    %18 = vector.broadcast %2 : vector<1x128xf32> to vector<128x128xf32>
    %19 = arith.addf %17, %18 : vector<128x128xf32>
    %20 = math.tanh %19 : vector<128x128xf32>
    %cst = arith.constant dense<0.000000e+00> : vector<128x128xf32>
    %21 = tpu.matmul %20, %3, %cst {dimension_numbers = #tpu.dot_dimension_numbers<[1], [0], [0], [1], [0, 0, 1, 1], [], []>} : vector<128x128xf32>, vector<128x128xf32>, vector<128x128xf32> -> vector<128x128xf32>
    %22 = vector.broadcast %4 : vector<1x128xf32> to vector<128x128xf32>
    %23 = arith.addf %21, %22 : vector<128x128xf32>
    %24 = math.tanh %23 : vector<128x128xf32>
    %cst_20 = arith.constant dense<0.000000e+00> : vector<128x128xf32>
    %25 = tpu.matmul %24, %5, %cst_20 {dimension_numbers = #tpu.dot_dimension_numbers<[1], [0], [0], [1], [0, 0, 1, 1], [], []>} : vector<128x128xf32>, vector<128x128xf32>, vector<128x128xf32> -> vector<128x128xf32>
    %26 = vector.broadcast %6 : vector<1x128xf32> to vector<128x128xf32>
    %27 = arith.addf %25, %26 : vector<128x128xf32>
    %28 = math.tanh %27 : vector<128x128xf32>
    %cst_21 = arith.constant dense<0.000000e+00> : vector<128x128xf32>
    %29 = tpu.matmul %28, %7, %cst_21 {dimension_numbers = #tpu.dot_dimension_numbers<[1], [0], [0], [1], [0, 0, 1, 1], [], []>} : vector<128x128xf32>, vector<128x128xf32>, vector<128x128xf32> -> vector<128x128xf32>
    %30 = vector.broadcast %8 : vector<1x128xf32> to vector<128x128xf32>
    %31 = arith.addf %29, %30 : vector<128x128xf32>
    %32 = vector.extract_strided_slice %31 {offsets = [0, 0], sizes = [128, 4], strides = [1, 1]} : vector<128x128xf32> to vector<128x4xf32>
    %c0_22 = arith.constant 0 : index
    %c0_23 = arith.constant 0 : index
    %33 = vector.load %arg11[%c0_22, %c0_23] : memref<256x4xf32, #tpu.memory_space<vmem>>, vector<128x4xf32>
    tpu.vector_store %arg11[%c0_22, %c0_23], %32 {strides = array<i32>} : memref<256x4xf32, #tpu.memory_space<vmem>>, vector<128x4xf32>,
    %c128 = arith.constant 128 : index
    %c0_24 = arith.constant 0 : index
    %34 = vector.load %arg1[%c128, %c0_24] : memref<256x1xf32, #tpu.memory_space<vmem>>, vector<128x1xf32>
    %c128_25 = arith.constant 128 : index
    %c0_26 = arith.constant 0 : index
    %35 = vector.load %arg2[%c128_25, %c0_26] : memref<256x1xf32, #tpu.memory_space<vmem>>, vector<128x1xf32>
    %36 = vector.broadcast %34 : vector<128x1xf32> to vector<128x128xf32>
    %37 = vector.broadcast %0 : vector<1x128xf32> to vector<128x128xf32>
    %38 = arith.mulf %36, %37 : vector<128x128xf32>
    %39 = vector.broadcast %35 : vector<128x1xf32> to vector<128x128xf32>
    %40 = vector.broadcast %1 : vector<1x128xf32> to vector<128x128xf32>
    %41 = arith.mulf %39, %40 : vector<128x128xf32>
    %42 = arith.addf %38, %41 : vector<128x128xf32>
    %43 = vector.broadcast %2 : vector<1x128xf32> to vector<128x128xf32>
    %44 = arith.addf %42, %43 : vector<128x128xf32>
    %45 = math.tanh %44 : vector<128x128xf32>
    %cst_27 = arith.constant dense<0.000000e+00> : vector<128x128xf32>
    %46 = tpu.matmul %45, %3, %cst_27 {dimension_numbers = #tpu.dot_dimension_numbers<[1], [0], [0], [1], [0, 0, 1, 1], [], []>} : vector<128x128xf32>, vector<128x128xf32>, vector<128x128xf32> -> vector<128x128xf32>
    %47 = vector.broadcast %4 : vector<1x128xf32> to vector<128x128xf32>
    %48 = arith.addf %46, %47 : vector<128x128xf32>
    %49 = math.tanh %48 : vector<128x128xf32>
    %cst_28 = arith.constant dense<0.000000e+00> : vector<128x128xf32>
    %50 = tpu.matmul %49, %5, %cst_28 {dimension_numbers = #tpu.dot_dimension_numbers<[1], [0], [0], [1], [0, 0, 1, 1], [], []>} : vector<128x128xf32>, vector<128x128xf32>, vector<128x128xf32> -> vector<128x128xf32>
    %51 = vector.broadcast %6 : vector<1x128xf32> to vector<128x128xf32>
    %52 = arith.addf %50, %51 : vector<128x128xf32>
    %53 = math.tanh %52 : vector<128x128xf32>
    %cst_29 = arith.constant dense<0.000000e+00> : vector<128x128xf32>
    %54 = tpu.matmul %53, %7, %cst_29 {dimension_numbers = #tpu.dot_dimension_numbers<[1], [0], [0], [1], [0, 0, 1, 1], [], []>} : vector<128x128xf32>, vector<128x128xf32>, vector<128x128xf32> -> vector<128x128xf32>
    %55 = vector.broadcast %8 : vector<1x128xf32> to vector<128x128xf32>
    %56 = arith.addf %54, %55 : vector<128x128xf32>
    %57 = vector.extract_strided_slice %56 {offsets = [0, 0], sizes = [128, 4], strides = [1, 1]} : vector<128x128xf32> to vector<128x4xf32>
    %c128_30 = arith.constant 128 : index
    %c0_31 = arith.constant 0 : index
    %58 = vector.load %arg11[%c128_30, %c0_31] : memref<256x4xf32, #tpu.memory_space<vmem>>, vector<128x4xf32>
    tpu.vector_store %arg11[%c128_30, %c0_31], %57 {strides = array<i32>} : memref<256x4xf32, #tpu.memory_space<vmem>>, vector<128x4xf32>,
    return
  }
  func.func @transform_0(%arg0: i32) -> (i32, i32) {
    %c0_i32 = arith.constant 0 : i32
    %c0_i32_0 = arith.constant 0 : i32
    return %arg0, %c0_i32 : i32, i32
  }
  func.func @transform_1(%arg0: i32) -> (i32, i32) {
    %c0_i32 = arith.constant 0 : i32
    %c0_i32_0 = arith.constant 0 : i32
    return %arg0, %c0_i32 : i32, i32
  }
  func.func @transform_2(%arg0: i32) -> (i32, i32) {
    %c0_i32 = arith.constant 0 : i32
    %c0_i32_0 = arith.constant 0 : i32
    %c0_i32_1 = arith.constant 0 : i32
    return %c0_i32, %c0_i32_0 : i32, i32
  }
  func.func @transform_3(%arg0: i32) -> (i32, i32) {
    %c0_i32 = arith.constant 0 : i32
    %c0_i32_0 = arith.constant 0 : i32
    %c0_i32_1 = arith.constant 0 : i32
    return %c0_i32, %c0_i32_0 : i32, i32
  }
  func.func @transform_4(%arg0: i32) -> (i32, i32) {
    %c0_i32 = arith.constant 0 : i32
    %c0_i32_0 = arith.constant 0 : i32
    %c0_i32_1 = arith.constant 0 : i32
    return %c0_i32, %c0_i32_0 : i32, i32
  }
  func.func @transform_5(%arg0: i32) -> (i32, i32) {
    %c0_i32 = arith.constant 0 : i32
    %c0_i32_0 = arith.constant 0 : i32
    %c0_i32_1 = arith.constant 0 : i32
    return %c0_i32, %c0_i32_0 : i32, i32
  }
  func.func @transform_6(%arg0: i32) -> (i32, i32) {
    %c0_i32 = arith.constant 0 : i32
    %c0_i32_0 = arith.constant 0 : i32
    %c0_i32_1 = arith.constant 0 : i32
    return %c0_i32, %c0_i32_0 : i32, i32
  }
  func.func @transform_7(%arg0: i32) -> (i32, i32) {
    %c0_i32 = arith.constant 0 : i32
    %c0_i32_0 = arith.constant 0 : i32
    %c0_i32_1 = arith.constant 0 : i32
    return %c0_i32, %c0_i32_0 : i32, i32
  }
  func.func @transform_8(%arg0: i32) -> (i32, i32) {
    %c0_i32 = arith.constant 0 : i32
    %c0_i32_0 = arith.constant 0 : i32
    %c0_i32_1 = arith.constant 0 : i32
    return %c0_i32, %c0_i32_0 : i32, i32
  }
  func.func @transform_9(%arg0: i32) -> (i32, i32) {
    %c0_i32 = arith.constant 0 : i32
    %c0_i32_0 = arith.constant 0 : i32
    %c0_i32_1 = arith.constant 0 : i32
    return %c0_i32, %c0_i32_0 : i32, i32
  }
  func.func @transform_10(%arg0: i32) -> (i32, i32) {
    %c0_i32 = arith.constant 0 : i32
    %c0_i32_0 = arith.constant 0 : i32
    return %arg0, %c0_i32 : i32, i32
  }
}

</mosaic_0001>

<bundles_post_ra>
// kernel: tpu_custom_call.1
= control target key start
LH: loop header
LB: loop body
LE: loop exit
PB: predicated region body
PF: predicated region fallthrough
CT: control target
= control target key end

     0   :  { %v2371_v0 = vmov 0   ;;  %vm860_vm0 = vcmask 31744   ;;  %s3400_s0 = inlined_call_operand.vmem [shape: f32[256,1], index: 0, kind: input, shape index: {}]   ;;  %s3401_s1 = inlined_call_operand.vmem [shape: f32[256,1], index: 1, kind: input, shape index: {}]   ;;  %s3402_s4 = inlined_call_operand.vmem [shape: f32[128,128], index: 4, kind: input, shape index: {}]   ;;  %s3403_s2 = inlined_call_operand.vmem [shape: f32[2,128], index: 2, kind: input, shape index: {}]   ;;  %s3404_s3 = inlined_call_operand.vmem [shape: f32[1,128], index: 3, kind: input, shape index: {}]   ;;  %s3405_s6 = inlined_call_operand.vmem [shape: f32[128,128], index: 6, kind: input, shape index: {}]   ;;  %s3406_s8 = inlined_call_operand.vmem [shape: f32[128,128], index: 8, kind: input, shape index: {}]   ;;  %s3407_s5 = inlined_call_operand.vmem [shape: f32[1,128], index: 5, kind: input, shape index: {}]   ;;  %s3408_s7 = inlined_call_operand.vmem [shape: f32[1,128], index: 7, kind: input, shape index: {}]   ;;  %s3409_s9 = inlined_call_operand.vmem [shape: f32[1,128], index: 9, kind: input, shape index: {}]   ;;  %s3410_s10 = inlined_call_operand.vmem [shape: f32[256,4], index: 10, kind: output, shape index: {}]  }
   0x1   :  { %2172 = vset.pattern.permute.xlu1 %v2371_v0  ;;  %2171 = vset.pattern.permute.xlu0 %v2371_v0  ;;  %v90_v1 = vld [vmem:[%s3400_s0 + $0x8] sm:$0xff]  ;;  %v89_v2 = vld [vmem:[%s3400_s0] sm:$0xff]  ;;  %v107_v5 = vld [vmem:[%s3401_s1 + $0x10] sm:$0xff] }
   0x2   :  { %128 = vperm.xlu1 %2172, %v90_v1   ;;  %123 = vperm.xlu0 %2171, %v89_v2   ;;  %v106_v3 = vld [vmem:[%s3401_s1 + $0x8] sm:$0xff]  ;;  %v105_v4 = vld [vmem:[%s3401_s1] sm:$0xff]  ;;  %v91_v6 = vld [vmem:[%s3400_s0 + $0x10] sm:$0xff] }
   0x3   :  { %v108_v7 = vld [vmem:[%s3401_s1 + $0x18] sm:$0xff]  ;;  %v109_v9 = vld [vmem:[%s3401_s1 + $0x20] sm:$0xff]  ;;  %v110_v11 = vld [vmem:[%s3401_s1 + $0x28] sm:$0xff] }
   0x4   :  { %v92_v8 = vld [vmem:[%s3400_s0 + $0x18] sm:$0xff]  ;;  %v93_v10 = vld [vmem:[%s3400_s0 + $0x20] sm:$0xff]  ;;  %v94_v12 = vld [vmem:[%s3400_s0 + $0x28] sm:$0xff] }
   0x5   :  { %v2466_v13 = vld [vmem:[%s3402_s4 + $0x78] sm:$0xff]  ;;  %v2471_v14 = vld [vmem:[%s3402_s4 + $0x70] sm:$0xff]  ;;  %v2485_v17 = vld [vmem:[%s3402_s4 + $0x68] sm:$0xff] }
   0x6   :  { %228 = vperm.xlu1 %2172, %v106_v3   ;;  %223 = vperm.xlu0 %2171, %v105_v4   ;;  %v111_v15 = vld [vmem:[%s3401_s1 + $0x30] sm:$0xff]  ;;  %v112_v18 = vld [vmem:[%s3401_s1 + $0x38] sm:$0xff]  ;;  %v2498_v20 = vld [vmem:[%s3402_s4 + $0x60] sm:$0xff] }
   0x7   :  { %v95_v16 = vld [vmem:[%s3400_s0 + $0x30] sm:$0xff]  ;;  %1834 = vmatprep.subr.mxu0 %v2466_v13  ;;  %v96_v19 = vld [vmem:[%s3400_s0 + $0x38] sm:$0xff]  ;;  %v113_v22 = vld [vmem:[%s3401_s1 + $0x40] sm:$0xff] }
   0x8   :  { %1835 = vmatpush3.msra.mxu0 %v2466_v13  ;;  %v2504_v21 = vld [vmem:[%s3402_s4 + $0x58] sm:$0xff]  ;;  %v97_v23 = vld [vmem:[%s3400_s0 + $0x40] sm:$0xff]  ;;  %v2518_v24 = vld [vmem:[%s3402_s4 + $0x50] sm:$0xff] }
   0x9   :  { %1836 = vmatprep.subr.mxu0 %v2471_v14  ;;  %v114_v25 = vld [vmem:[%s3401_s1 + $0x48] sm:$0xff]  ;;  %v2537_v28 = vld [vmem:[%s3402_s4 + $0x40] sm:$0xff]  ;;  %v115_v29 = vld [vmem:[%s3401_s1 + $0x50] sm:$0xff] }
   0xa   :  { %233 = vperm.xlu1 %2172, %v107_v5   ;;  %133 = vperm.xlu0 %2171, %v91_v6   ;;  %v98_v26 = vld [vmem:[%s3400_s0 + $0x48] sm:$0xff]  ;;  %v99_v30 = vld [vmem:[%s3400_s0 + $0x50] sm:$0xff]  ;;  %v2551_v31 = vld [vmem:[%s3402_s4 + $0x38] sm:$0xff] }
   0xb   :  { %1837 = vmatpush3.msra.mxu0 %v2471_v14  ;;  %v2531_v27 = vld [vmem:[%s3402_s4 + $0x48] sm:$0xff]  ;;  %v116_v32 = vld [vmem:[%s3401_s1 + $0x58] sm:$0xff]  ;;  %v2564_v34 = vld [vmem:[%s3402_s4 + $0x30] sm:$0xff] }
   0xc   :  { %1838 = vmatprep.subr.mxu0 %v2485_v17  ;;  %v100_v33 = vld [vmem:[%s3400_s0 + $0x58] sm:$0xff]  ;;  %v2570_v35 = vld [vmem:[%s3402_s4 + $0x28] sm:$0xff]  ;;  %v117_v36 = vld [vmem:[%s3401_s1 + $0x60] sm:$0xff] }
   0xd   :  { %1839 = vmatpush3.msra.mxu0 %v2485_v17  ;;  %v101_v37 = vld [vmem:[%s3400_s0 + $0x60] sm:$0xff]  ;;  %v118_v39 = vld [vmem:[%s3401_s1 + $0x68] sm:$0xff]  ;;  %v2597_v41 = vld [vmem:[%s3402_s4 + $0x18] sm:$0xff] }
   0xe   :  { %238 = vperm.xlu1 %2172, %v108_v7   ;;  %138 = vperm.xlu0 %2171, %v92_v8   ;;  %v2584_v38 = vld [vmem:[%s3402_s4 + $0x20] sm:$0xff]  ;;  %v102_v40 = vld [vmem:[%s3400_s0 + $0x68] sm:$0xff]  ;;  %v2603_v42 = vld [vmem:[%s3402_s4 + $0x10] sm:$0xff] }
   0xf   :  { %1840 = vmatprep.subr.mxu0 %v2498_v20  ;;  %v119_v43 = vld [vmem:[%s3401_s1 + $0x70] sm:$0xff]  ;;  %v2617_v45 = vld [vmem:[%s3402_s4 + $0x8] sm:$0xff]  ;;  %v120_v46 = vld [vmem:[%s3401_s1 + $0x78] sm:$0xff] }
  0x10   :  { %1841 = vmatpush3.msra.mxu0 %v2498_v20  ;;  %v103_v44 = vld [vmem:[%s3400_s0 + $0x70] sm:$0xff]  ;;  %v104_v47 = vld [vmem:[%s3400_s0 + $0x78] sm:$0xff]  ;;  %v2630_v48 = vld [vmem:[%s3402_s4] sm:$0xff] }
  0x11   :  { %1842 = vmatprep.subr.mxu0 %v2504_v21  ;;  %v893_v49 = vld [vmem:[%s3401_s1 + $0x80] sm:$0xff]  ;;  %v894_v51 = vld [vmem:[%s3401_s1 + $0x88] sm:$0xff]  ;;  %v895_v53 = vld [vmem:[%s3401_s1 + $0x90] sm:$0xff] }
  0x12   :  { %243 = vperm.xlu1 %2172, %v109_v9   ;;  %143 = vperm.xlu0 %2171, %v93_v10   ;;  %v877_v50 = vld [vmem:[%s3400_s0 + $0x80] sm:$0xff]  ;;  %v878_v52 = vld [vmem:[%s3400_s0 + $0x88] sm:$0xff]  ;;  %v879_v54 = vld [vmem:[%s3400_s0 + $0x90] sm:$0xff] }
  0x13   :  { %1843 = vmatpush3.msra.mxu0 %v2504_v21  ;;  %v896_v55 = vld [vmem:[%s3401_s1 + $0x98] sm:$0xff]  ;;  %v897_v57 = vld [vmem:[%s3401_s1 + $0xa0] sm:$0xff]  ;;  %v898_v59 = vld [vmem:[%s3401_s1 + $0xa8] sm:$0xff] }
  0x14   :  { %1844 = vmatprep.subr.mxu0 %v2518_v24  ;;  %v880_v56 = vld [vmem:[%s3400_s0 + $0x98] sm:$0xff]  ;;  %v881_v58 = vld [vmem:[%s3400_s0 + $0xa0] sm:$0xff]  ;;  %v882_v60 = vld [vmem:[%s3400_s0 + $0xa8] sm:$0xff] }
  0x15   :  { %1845 = vmatpush3.msra.mxu0 %v2518_v24  ;;  %v899_v61 = vld [vmem:[%s3401_s1 + $0xb0] sm:$0xff]  ;;  %v900_v63 = vld [vmem:[%s3401_s1 + $0xb8] sm:$0xff]  ;;  %v901_v1 = vld [vmem:[%s3401_s1 + $0xc0] sm:$0xff] }
  0x16   :  { %248 = vperm.xlu1 %2172, %v110_v11   ;;  %148 = vperm.xlu0 %2171, %v94_v12   ;;  %v883_v62 = vld [vmem:[%s3400_s0 + $0xb0] sm:$0xff]  ;;  %v884_v0 = vld [vmem:[%s3400_s0 + $0xb8] sm:$0xff]  ;;  %v885_v2 = vld [vmem:[%s3400_s0 + $0xc0] sm:$0xff] }
  0x17   :  { %1846 = vmatprep.subr.mxu0 %v2531_v27  ;;  %v902_v3 = vld [vmem:[%s3401_s1 + $0xc8] sm:$0xff]  ;;  %v903_v5 = vld [vmem:[%s3401_s1 + $0xd0] sm:$0xff]  ;;  %v904_v7 = vld [vmem:[%s3401_s1 + $0xd8] sm:$0xff] }
  0x18   :  { %1847 = vmatpush3.msra.mxu0 %v2531_v27  ;;  %v886_v4 = vld [vmem:[%s3400_s0 + $0xc8] sm:$0xff]  ;;  %v887_v6 = vld [vmem:[%s3400_s0 + $0xd0] sm:$0xff]  ;;  %v888_v8 = vld [vmem:[%s3400_s0 + $0xd8] sm:$0xff] }
  0x19   :  { %1848 = vmatprep.subr.mxu0 %v2537_v28  ;;  %v905_v9 = vld [vmem:[%s3401_s1 + $0xe0] sm:$0xff]  ;;  %v906_v11 = vld [vmem:[%s3401_s1 + $0xe8] sm:$0xff] }
  0x1a   :  { %253 = vperm.xlu1 %2172, %v111_v15   ;;  %153 = vperm.xlu0 %2171, %v95_v16   ;;  %v889_v10 = vld [vmem:[%s3400_s0 + $0xe0] sm:$0xff]  ;;  %v890_v12 = vld [vmem:[%s3400_s0 + $0xe8] sm:$0xff]  ;;  %v907_v15 = vld [vmem:[%s3401_s1 + $0xf0] sm:$0xff] }
  0x1b   :  { %1849 = vmatpush3.msra.mxu0 %v2537_v28  ;;  %v891_v16 = vld [vmem:[%s3400_s0 + $0xf0] sm:$0xff] }
  0x1c   :  { %1850 = vmatprep.subr.mxu0 %v2551_v31 }
  0x1d   :  { %1851 = vmatpush3.msra.mxu0 %v2551_v31 }
  0x1e   :  { %258 = vperm.xlu1 %2172, %v112_v18   ;;  %158 = vperm.xlu0 %2171, %v96_v19   ;;  %v908_v18 = vld [vmem:[%s3401_s1 + $0xf8] sm:$0xff] }
  0x1f   :  { %1852 = vmatprep.subr.mxu0 %v2564_v34  ;;  %v892_v19 = vld [vmem:[%s3400_s0 + $0xf8] sm:$0xff] }
  0x20   :  { %1853 = vmatpush3.msra.mxu0 %v2564_v34 }
  0x21   :  { %1854 = vmatprep.subr.mxu0 %v2570_v35 }
  0x22   :  { %263 = vperm.xlu1 %2172, %v113_v22   ;;  %163 = vperm.xlu0 %2171, %v97_v23  }
  0x23   :  { %1855 = vmatpush3.msra.mxu0 %v2570_v35 }
  0x24   :  { %1856 = vmatprep.subr.mxu0 %v2584_v38 }
  0x25   :  { %1857 = vmatpush3.msra.mxu0 %v2584_v38 }
  0x26   :  { %268 = vperm.xlu1 %2172, %v114_v25   ;;  %168 = vperm.xlu0 %2171, %v98_v26   ;;  %v2734_v25 = vld [vmem:[%s3403_s2] ss:$0 sm:$0xff]  ;;  %v2739_v26 = vld [vmem:[%s3403_s2 + $0x1] ss:$0 sm:$0xff] }
  0x27   :  { %1858 = vmatprep.subr.mxu0 %v2597_v41 }
  0x28   :  { %1859 = vmatpush3.msra.mxu0 %v2597_v41 }
  0x29   :  { %1860 = vmatprep.subr.mxu0 %v2603_v42 }
  0x2a   :  { %273 = vperm.xlu1 %2172, %v115_v29   ;;  %173 = vperm.xlu0 %2171, %v99_v30  }
  0x2b   :  { %1861 = vmatpush3.msra.mxu0 %v2603_v42 }
  0x2c   :  { %1862 = vmatprep.subr.mxu0 %v2617_v45 }
  0x2d   :  { %1863 = vmatpush3.msra.mxu0 %v2617_v45 }
  0x2e   :  { %278 = vperm.xlu1 %2172, %v116_v32   ;;  %178 = vperm.xlu0 %2171, %v100_v33   ;;  %v2744_v32 = vld [vmem:[%s3405_s6 + $0x78] sm:$0xff]  ;;  %v69_v33 = vld [vmem:[%s3405_s6 + $0x70] sm:$0xff] }
  0x2f   :  { %1864 = vmatprep.subr.mxu0 %v2630_v48  ;;  %1890 = vmatprep.subr.mxu1 %v2744_v32 }
  0x30   :  { %1865 = vmatpush3.msra.mxu0 %v2630_v48  ;;  %1891 = vmatpush3.msra.mxu1 %v2744_v32 }
  0x31   :  { %1892 = vmatprep.subr.mxu1 %v69_v33 }
  0x32   :  { %283 = vperm.xlu1 %2172, %v117_v36   ;;  %183 = vperm.xlu0 %2171, %v101_v37  }
  0x33   :  { %1893 = vmatpush3.msra.mxu1 %v69_v33 }
  0x36   :  { %288 = vperm.xlu1 %2172, %v118_v39   ;;  %188 = vperm.xlu0 %2171, %v102_v40  }
  0x3a   :  { %293 = vperm.xlu1 %2172, %v119_v43   ;;  %193 = vperm.xlu0 %2171, %v103_v44   ;;  %v2757_v43 = vld [vmem:[%s3404_s3] ss:$0 sm:$0xff]  ;;  %v68_v44 = vld [vmem:[%s3405_s6 + $0x68] sm:$0xff] }
  0x3b   :  { %1894 = vmatprep.subr.mxu1 %v68_v44 }
  0x3c   :  { %1895 = vmatpush3.msra.mxu1 %v68_v44 }
  0x3e   :  { %298 = vperm.xlu1 %2172, %v120_v46   ;;  %198 = vperm.xlu0 %2171, %v104_v47  }
  0x42   :  { %1007 = vperm.xlu1 %2172, %v893_v49   ;;  %911 = vperm.xlu0 %2171, %v877_v50  }
  0x46   :  { %1012 = vperm.xlu1 %2172, %v894_v51   ;;  %916 = vperm.xlu0 %2171, %v878_v52   ;;  %v67_v51 = vld [vmem:[%s3405_s6 + $0x60] sm:$0xff] }
  0x47   :  { %1896 = vmatprep.subr.mxu1 %v67_v51 }
  0x48   :  { %1897 = vmatpush3.msra.mxu1 %v67_v51 }
  0x4a   :  { %1017 = vperm.xlu1 %2172, %v895_v53   ;;  %921 = vperm.xlu0 %2171, %v879_v54  }
  0x4e   :  { %1022 = vperm.xlu1 %2172, %v896_v55   ;;  %926 = vperm.xlu0 %2171, %v880_v56   ;;  %v66_v56 = vld [vmem:[%s3405_s6 + $0x58] sm:$0xff] }
  0x4f   :  { %1898 = vmatprep.subr.mxu1 %v66_v56 }
  0x50   :  { %1899 = vmatpush3.msra.mxu1 %v66_v56 }
  0x52   :  { %1027 = vperm.xlu1 %2172, %v897_v57   ;;  %931 = vperm.xlu0 %2171, %v881_v58  }
  0x56   :  { %1032 = vperm.xlu1 %2172, %v898_v59   ;;  %936 = vperm.xlu0 %2171, %v882_v60   ;;  %v65_v60 = vld [vmem:[%s3405_s6 + $0x50] sm:$0xff] }
  0x57   :  { %1900 = vmatprep.subr.mxu1 %v65_v60 }
  0x58   :  { %1901 = vmatpush3.msra.mxu1 %v65_v60 }
  0x5a   :  { %1037 = vperm.xlu1 %2172, %v899_v61   ;;  %941 = vperm.xlu0 %2171, %v883_v62  }
  0x5e   :  { %1042 = vperm.xlu1 %2172, %v900_v63   ;;  %946 = vperm.xlu0 %2171, %v884_v0  }
  0x62   :  { %1047 = vperm.xlu1 %2172, %v901_v1   ;;  %951 = vperm.xlu0 %2171, %v885_v2  }
  0x66   :  { %1052 = vperm.xlu1 %2172, %v902_v3   ;;  %956 = vperm.xlu0 %2171, %v886_v4  }
  0x6a   :  { %1057 = vperm.xlu1 %2172, %v903_v5   ;;  %961 = vperm.xlu0 %2171, %v887_v6  }
  0x6e   :  { %1062 = vperm.xlu1 %2172, %v904_v7   ;;  %966 = vperm.xlu0 %2171, %v888_v8  }
  0x72   :  { %1067 = vperm.xlu1 %2172, %v905_v9   ;;  %971 = vperm.xlu0 %2171, %v889_v10  }
  0x76   :  { %1072 = vperm.xlu1 %2172, %v906_v11   ;;  %976 = vperm.xlu0 %2171, %v890_v12  }
  0x7a   :  { %1077 = vperm.xlu1 %2172, %v907_v15   ;;  %981 = vperm.xlu0 %2171, %v891_v16  }
  0x7d   :  { %v129_v22 = vpop.permute.xlu1 %128  ;;  %v124_v23 = vpop.permute.xlu0 %123 }
  0x7e   :  { %1082 = vperm.xlu1 %2172, %v908_v18   ;;  %986 = vperm.xlu0 %2171, %v892_v19   ;;  %v206_v36 = vmul.f32 %v2734_v25, %v129_v22  ;;  %v205_v37 = vmul.f32 %v2734_v25, %v124_v23 }
  0x81   :  { %v229_v29 = vpop.permute.xlu1 %228  ;;  %v224_v30 = vpop.permute.xlu0 %223 }
  0x82   :  { %v306_v39 = vmul.f32 %v2739_v26, %v229_v29  ;;  %v305_v40 = vmul.f32 %v2739_v26, %v224_v30 }
  0x84   :  { %v322_v46 = vadd.f32 %v306_v39, %v206_v36  ;;  %v321_v47 = vadd.f32 %v305_v40, %v205_v37 }
  0x85   :  { %v234_v49 = vpop.permute.xlu1 %233  ;;  %v134_v50 = vpop.permute.xlu0 %133 }
  0x86   :  { %v344_v52 = vadd.f32 %v2757_v43, %v322_v46  ;;  %v307_v53 = vmul.f32 %v2739_v26, %v234_v49  ;;  %v207_v54 = vmul.f32 %v2734_v25, %v134_v50  ;;  %v343_v55 = vadd.f32 %v2757_v43, %v321_v47 }
  0x88   :  { %2173 = vtanh.f32 %v344_v52  ;;  %v323_v57 = vadd.f32 %v307_v53, %v207_v54 }
  0x89   :  { %v239_v58 = vpop.permute.xlu1 %238  ;;  %v139_v59 = vpop.permute.xlu0 %138  ;;  %2175 = vtanh.f32 %v343_v55 }
  0x8a   :  { %v345_v61 = vadd.f32 %v2757_v43, %v323_v57  ;;  %v308_v62 = vmul.f32 %v2739_v26, %v239_v58  ;;  %v208_v63 = vmul.f32 %v2734_v25, %v139_v59 }
  0x8c   :  { %2177 = vtanh.f32 %v345_v61  ;;  %v324_v0 = vadd.f32 %v308_v62, %v208_v63 }
  0x8d   :  { %v244_v1 = vpop.permute.xlu1 %243  ;;  %v144_v2 = vpop.permute.xlu0 %143 }
  0x8e   :  { %v346_v3 = vadd.f32 %v2757_v43, %v324_v0  ;;  %v309_v4 = vmul.f32 %v2739_v26, %v244_v1  ;;  %v209_v5 = vmul.f32 %v2734_v25, %v144_v2 }
  0x90   :  { %2179 = vtanh.f32 %v346_v3  ;;  %v325_v6 = vadd.f32 %v309_v4, %v209_v5 }
  0x91   :  { %v249_v7 = vpop.permute.xlu1 %248  ;;  %v149_v8 = vpop.permute.xlu0 %148 }
  0x92   :  { %v347_v9 = vadd.f32 %v2757_v43, %v325_v6  ;;  %v310_v10 = vmul.f32 %v2739_v26, %v249_v7  ;;  %v210_v11 = vmul.f32 %v2734_v25, %v149_v8 }
  0x94   :  { %2181 = vtanh.f32 %v347_v9  ;;  %v326_v12 = vadd.f32 %v310_v10, %v210_v11 }
  0x95   :  { %v2174_v15 = vpop.eup %2173  ;;  %v254_v16 = vpop.permute.xlu1 %253 }
  0x96   :  { %v154_v18 = vpop.permute.xlu0 %153  ;;  %v2176_v19 = vpop.eup %2175  ;;  %v348_v22 = vadd.f32 %v2757_v43, %v326_v12  ;;  %v311_v23 = vmul.f32 %v2739_v26, %v254_v16 }
  0x97   :  { %v211_v29 = vmul.f32 %v2734_v25, %v154_v18  ;;  %1866 = vmatprep.mubr.f32.mxu0 %v2176_v19 }
  0x98   :  { %2183 = vtanh.f32 %v348_v22  ;;  %1867 = vmatmul.mubr.f32.vlgmr.msra.gmra.mxu0 %v2174_v15 }
  0x99   :  { %v327_v30 = vadd.f32 %v311_v23, %v211_v29  ;;  %v2178_v33 = vpop.eup %2177  ;;  %v259_v36 = vpop.permute.xlu1 %258 }
  0x9a   :  { %v159_v37 = vpop.permute.xlu0 %158  ;;  %v312_v40 = vmul.f32 %v2739_v26, %v259_v36  ;;  %1869 = vmatprep.mubr.f32.mxu0 %v2178_v33 }
  0x9b   :  { %v349_v39 = vadd.f32 %v2757_v43, %v327_v30  ;;  %v212_v44 = vmul.f32 %v2734_v25, %v159_v37 }
  0x9d   :  { %2185 = vtanh.f32 %v349_v39  ;;  %v328_v46 = vadd.f32 %v312_v40, %v212_v44  ;;  %v2180_v47 = vpop.eup %2179  ;;  %v264_v49 = vpop.permute.xlu1 %263 }
  0x9e   :  { %v164_v50 = vpop.permute.xlu0 %163  ;;  %v313_v52 = vmul.f32 %v2739_v26, %v264_v49  ;;  %1870 = vmatmul.mubr.f32.gmra.mxu0 %v2180_v47 }
  0x9f   :  { %v350_v51 = vadd.f32 %v2757_v43, %v328_v46  ;;  %v213_v53 = vmul.f32 %v2734_v25, %v164_v50 }
  0xa1   :  { %2187 = vtanh.f32 %v350_v51  ;;  %v329_v54 = vadd.f32 %v313_v52, %v213_v53  ;;  %v2182_v55 = vpop.eup %2181  ;;  %v269_v56 = vpop.permute.xlu1 %268 }
  0xa2   :  { %v169_v57 = vpop.permute.xlu0 %168  ;;  %v314_v59 = vmul.f32 %v2739_v26, %v269_v56  ;;  %1872 = vmatprep.mubr.f32.mxu0 %v2182_v55 }
  0xa3   :  { %v351_v58 = vadd.f32 %v2757_v43, %v329_v54  ;;  %v214_v60 = vmul.f32 %v2734_v25, %v169_v57 }
  0xa5   :  { %2189 = vtanh.f32 %v351_v58  ;;  %v330_v61 = vadd.f32 %v314_v59, %v214_v60  ;;  %v2184_v62 = vpop.eup %2183  ;;  %v274_v63 = vpop.permute.xlu1 %273 }
  0xa6   :  { %v174_v0 = vpop.permute.xlu0 %173  ;;  %v315_v2 = vmul.f32 %v2739_v26, %v274_v63  ;;  %1873 = vmatmul.mubr.f32.gmra.mxu0 %v2184_v62 }
  0xa7   :  { %v352_v1 = vadd.f32 %v2757_v43, %v330_v61  ;;  %v215_v3 = vmul.f32 %v2734_v25, %v174_v0 }
  0xa9   :  { %2191 = vtanh.f32 %v352_v1  ;;  %v331_v4 = vadd.f32 %v315_v2, %v215_v3  ;;  %v279_v6 = vpop.permute.xlu1 %278  ;;  %v2819_v2 = vld [vmem:[%s3405_s6 + $0x48] sm:$0xff]  ;;  %v2826_v3 = vld [vmem:[%s3405_s6 + $0x40] sm:$0xff] }
  0xaa   :  { %v2186_v5 = vpop.eup %2185  ;;  %v179_v7 = vpop.permute.xlu0 %178  ;;  %v316_v9 = vmul.f32 %v2739_v26, %v279_v6  ;;  %1902 = vmatprep.subr.mxu1 %v2819_v2  ;;  %v2847_v6 = vld [vmem:[%s3405_s6 + $0x28] sm:$0xff] }
  0xab   :  { %v353_v8 = vadd.f32 %v2757_v43, %v331_v4  ;;  %v216_v10 = vmul.f32 %v2734_v25, %v179_v7  ;;  %1875 = vmatprep.mubr.f32.mxu0 %v2186_v5  ;;  %1903 = vmatpush3.msra.mxu1 %v2819_v2  ;;  %v2833_v4 = vld [vmem:[%s3405_s6 + $0x38] sm:$0xff]  ;;  %v2840_v5 = vld [vmem:[%s3405_s6 + $0x30] sm:$0xff]  ;;  %v2854_v7 = vld [vmem:[%s3405_s6 + $0x20] sm:$0xff] }
  0xac   :  { %1904 = vmatprep.subr.mxu1 %v2826_v3 }
  0xad   :  { %2193 = vtanh.f32 %v353_v8  ;;  %v332_v11 = vadd.f32 %v316_v9, %v216_v10  ;;  %v284_v15 = vpop.permute.xlu1 %283  ;;  %1905 = vmatpush3.msra.mxu1 %v2826_v3  ;;  %v2861_v8 = vld [vmem:[%s3405_s6 + $0x18] sm:$0xff]  ;;  %v2866_v9 = vld [vmem:[%s3405_s6 + $0x10] sm:$0xff]  ;;  %v2875_v10 = vld [vmem:[%s3405_s6 + $0x8] sm:$0xff] }
  0xae   :  { %v2188_v12 = vpop.eup %2187  ;;  %v184_v16 = vpop.permute.xlu0 %183  ;;  %v317_v19 = vmul.f32 %v2739_v26, %v284_v15  ;;  %1906 = vmatprep.subr.mxu1 %v2833_v4  ;;  %v2895_v15 = vld [vmem:[%s3406_s8 + $0x70] sm:$0xff] }
  0xaf   :  { %v354_v18 = vadd.f32 %v2757_v43, %v332_v11  ;;  %v217_v22 = vmul.f32 %v2734_v25, %v184_v16  ;;  %1876 = vmatmul.mubr.f32.gmra.mxu0 %v2188_v12  ;;  %1907 = vmatpush3.msra.mxu1 %v2833_v4  ;;  %v2882_v11 = vld [vmem:[%s3405_s6] sm:$0xff]  ;;  %v2890_v12 = vld [vmem:[%s3406_s8 + $0x78] sm:$0xff]  ;;  %v2902_v16 = vld [vmem:[%s3406_s8 + $0x68] sm:$0xff] }
  0xb0   :  { %1908 = vmatprep.subr.mxu1 %v2840_v5  ;;  %1946 = vmatprep.subr.mxu0 %v2890_v12 }
  0xb1   :  { %2195 = vtanh.f32 %v354_v18  ;;  %v333_v23 = vadd.f32 %v317_v19, %v217_v22  ;;  %v289_v30 = vpop.permute.xlu1 %288  ;;  %1909 = vmatpush3.msra.mxu1 %v2840_v5  ;;  %1947 = vmatpush3.msra.mxu0 %v2890_v12  ;;  %v2909_v18 = vld [vmem:[%s3406_s8 + $0x60] sm:$0xff]  ;;  %v2916_v19 = vld [vmem:[%s3406_s8 + $0x58] sm:$0xff] }
  0xb2   :  { %v2190_v29 = vpop.eup %2189  ;;  %v189_v33 = vpop.permute.xlu0 %188  ;;  %v318_v37 = vmul.f32 %v2739_v26, %v289_v30  ;;  %1910 = vmatprep.subr.mxu1 %v2847_v6  ;;  %1948 = vmatprep.subr.mxu0 %v2895_v15 }
  0xb3   :  { %v355_v36 = vadd.f32 %v2757_v43, %v333_v23  ;;  %v218_v39 = vmul.f32 %v2734_v25, %v189_v33  ;;  %1878 = vmatprep.mubr.f32.mxu0 %v2190_v29  ;;  %1911 = vmatpush3.msra.mxu1 %v2847_v6  ;;  %v2927_v29 = vld [vmem:[%s3406_s8 + $0x50] sm:$0xff] }
  0xb4   :  { %1912 = vmatprep.subr.mxu1 %v2854_v7  ;;  %1949 = vmatpush3.msra.mxu0 %v2895_v15 }
  0xb5   :  { %2197 = vtanh.f32 %v355_v36  ;;  %v334_v40 = vadd.f32 %v318_v37, %v218_v39  ;;  %v294_v46 = vpop.permute.xlu1 %293  ;;  %1913 = vmatpush3.msra.mxu1 %v2854_v7  ;;  %1950 = vmatprep.subr.mxu0 %v2902_v16  ;;  %v2944_v39 = vld [vmem:[%s3407_s5] ss:$0 sm:$0xff] }
  0xb6   :  { %v2192_v44 = vpop.eup %2191  ;;  %v194_v47 = vpop.permute.xlu0 %193  ;;  %v319_v50 = vmul.f32 %v2739_v26, %v294_v46  ;;  %1914 = vmatprep.subr.mxu1 %v2861_v8  ;;  %1951 = vmatpush3.msra.mxu0 %v2902_v16 }
  0xb7   :  { %v356_v49 = vadd.f32 %v2757_v43, %v334_v40  ;;  %v219_v51 = vmul.f32 %v2734_v25, %v194_v47  ;;  %1879 = vmatmul.mubr.f32.gmra.mxu0 %v2192_v44  ;;  %1915 = vmatpush3.msra.mxu1 %v2861_v8 }
  0xb8   :  { %1916 = vmatprep.subr.mxu1 %v2866_v9  ;;  %1952 = vmatprep.subr.mxu0 %v2909_v18 }
  0xb9   :  { %2199 = vtanh.f32 %v356_v49  ;;  %v335_v52 = vadd.f32 %v319_v50, %v219_v51  ;;  %v299_v54 = vpop.permute.xlu1 %298  ;;  %1917 = vmatpush3.msra.mxu1 %v2866_v9  ;;  %1953 = vmatpush3.msra.mxu0 %v2909_v18 }
  0xba   :  { %v2194_v53 = vpop.eup %2193  ;;  %v199_v55 = vpop.permute.xlu0 %198  ;;  %v320_v57 = vmul.f32 %v2739_v26, %v299_v54  ;;  %1918 = vmatprep.subr.mxu1 %v2875_v10  ;;  %1954 = vmatprep.subr.mxu0 %v2916_v19 }
  0xbb   :  { %v357_v56 = vadd.f32 %v2757_v43, %v335_v52  ;;  %v220_v58 = vmul.f32 %v2734_v25, %v199_v55  ;;  %1881 = vmatprep.mubr.f32.mxu0 %v2194_v53  ;;  %1919 = vmatpush3.msra.mxu1 %v2875_v10 }
  0xbc   :  { %1920 = vmatprep.subr.mxu1 %v2882_v11  ;;  %1955 = vmatpush3.msra.mxu0 %v2916_v19 }
  0xbd   :  { %2201 = vtanh.f32 %v357_v56  ;;  %v336_v59 = vadd.f32 %v320_v57, %v220_v58  ;;  %1921 = vmatpush3.msra.mxu1 %v2882_v11  ;;  %v2919_v22 = vpop.permute.xlu1 %1007  ;;  %1956 = vmatprep.subr.mxu0 %v2927_v29 }
  0xbe   :  { %v2196_v60 = vpop.eup %2195  ;;  %2002 = vmatprep.subr.mxu1 %v2466_v13  ;;  %v2921_v23 = vpop.permute.xlu0 %911  ;;  %1957 = vmatpush3.msra.mxu0 %v2927_v29 }
  0xbf   :  { %v358_v61 = vadd.f32 %v2757_v43, %v336_v59  ;;  %1882 = vmatmul.mubr.f32.gmra.mxu0 %v2196_v60 }
  0xc1   :  { %2203 = vtanh.f32 %v358_v61  ;;  %v2933_v30 = vpop.permute.xlu1 %1012 }
  0xc2   :  { %v2198_v62 = vpop.eup %2197  ;;  %v2935_v33 = vpop.permute.xlu0 %916 }
  0xc3   :  { %1884 = vmatprep.mubr.f32.mxu0 %v2198_v62 }
  0xc5   :  { %v2937_v36 = vpop.permute.xlu1 %1017 }
  0xc6   :  { %v2200_v63 = vpop.eup %2199  ;;  %v2939_v37 = vpop.permute.xlu0 %921 }
  0xc7   :  { %1885 = vmatmul.mubr.f32.gmra.mxu0 %v2200_v63 }
  0xc9   :  { %v2948_v49 = vpop.permute.xlu1 %1022 }
  0xca   :  { %v2202_v0 = vpop.eup %2201  ;;  %v2950_v50 = vpop.permute.xlu0 %926 }
  0xcb   :  { %1887 = vmatprep.mubr.f32.mxu0 %v2202_v0 }
  0xcd   :  { %v2954_v55 = vpop.permute.xlu1 %1027 }
  0xce   :  { %v2204_v1 = vpop.eup %2203  ;;  %v2956_v56 = vpop.permute.xlu0 %931 }
  0xcf   :  { %1888 = vmatmul.mubr.f32.gmra.mxu0 %v2204_v1 }
  0xd1   :  { %v2959_v60 = vpop.permute.xlu1 %1032 }
  0xd2   :  { %v2961_v61 = vpop.permute.xlu0 %936 }
 0x158   :  { %v1868_v40 = vpop.f32.mrf.mxu0 }
 0x159   :  { %v453_v44 = vadd.f32 %v1868_v40, %v2944_v39  ;;  %v2966_v40 = vpop.permute.xlu1 %1037 }
 0x15a   :  { %v447_v46 = vpop.f32.mrf.mxu0 }
 0x15b   :  { %v448_v47 = vadd.f32 %v2944_v39, %v447_v46 }
 0x15d   :  { %2205 = vtanh.f32 %v448_v47 }
 0x15e   :  { %2207 = vtanh.f32 %v453_v44  ;;  %v1871_v51 = vpop.f32.mrf.mxu0  ;;  %v2968_v44 = vpop.permute.xlu0 %941 }
 0x15f   :  { %v463_v52 = vadd.f32 %v1871_v51, %v2944_v39 }
 0x160   :  { %v457_v53 = vpop.f32.mrf.mxu0 }
 0x161   :  { %v458_v54 = vadd.f32 %v2944_v39, %v457_v53 }
 0x163   :  { %2209 = vtanh.f32 %v458_v54 }
 0x164   :  { %2211 = vtanh.f32 %v463_v52 }
 0x166   :  { %v1874_v57 = vpop.f32.mrf.mxu0 }
 0x167   :  { %v473_v58 = vadd.f32 %v1874_v57, %v2944_v39 }
 0x168   :  { %v467_v59 = vpop.f32.mrf.mxu0 }
 0x169   :  { %v468_v62 = vadd.f32 %v2944_v39, %v467_v59 }
 0x16a   :  { %v2206_v63 = vpop.eup %2205 }
 0x16b   :  { %v2208_v0 = vpop.eup %2207  ;;  %2213 = vtanh.f32 %v468_v62  ;;  %1922 = vmatprep.mubr.f32.mxu1 %v2206_v63 }
 0x16c   :  { %2215 = vtanh.f32 %v473_v58  ;;  %1923 = vmatmul.mubr.f32.vlgmr.msra.gmra.mxu1 %v2208_v0 }
 0x16d   :  { %2003 = vmatpush3.msra.mxu1 %v2466_v13  ;;  %v2978_v13 = vpop.permute.xlu1 %1042 }
 0x16e   :  { %2004 = vmatprep.subr.mxu1 %v2471_v14 }
 0x16f   :  { %v1877_v1 = vpop.f32.mrf.mxu0  ;;  %2005 = vmatpush3.msra.mxu1 %v2471_v14  ;;  %v2980_v14 = vpop.permute.xlu0 %946 }
 0x170   :  { %v2210_v46 = vpop.eup %2209  ;;  %v483_v47 = vadd.f32 %v1877_v1, %v2944_v39  ;;  %2006 = vmatprep.subr.mxu1 %v2485_v17 }
 0x171   :  { %v477_v51 = vpop.f32.mrf.mxu0  ;;  %v2212_v52 = vpop.eup %2211  ;;  %1925 = vmatprep.mubr.f32.mxu1 %v2210_v46  ;;  %2007 = vmatpush3.msra.mxu1 %v2485_v17 }
 0x172   :  { %v478_v53 = vadd.f32 %v2944_v39, %v477_v51  ;;  %1926 = vmatmul.mubr.f32.gmra.mxu1 %v2212_v52  ;;  %2008 = vmatprep.subr.mxu1 %v2498_v20 }
 0x173   :  { %2009 = vmatpush3.msra.mxu1 %v2498_v20  ;;  %v2992_v62 = vpop.permute.xlu0 %951 }
 0x174   :  { %2217 = vtanh.f32 %v478_v53  ;;  %2010 = vmatprep.subr.mxu1 %v2504_v21 }
 0x175   :  { %2219 = vtanh.f32 %v483_v47  ;;  %2011 = vmatpush3.msra.mxu1 %v2504_v21  ;;  %v2990_v21 = vpop.permute.xlu1 %1047 }
 0x176   :  { %2012 = vmatprep.subr.mxu1 %v2518_v24 }
 0x177   :  { %v1880_v54 = vpop.f32.mrf.mxu0  ;;  %2013 = vmatpush3.msra.mxu1 %v2518_v24 }
 0x178   :  { %v2214_v17 = vpop.eup %2213  ;;  %v493_v57 = vadd.f32 %v1880_v54, %v2944_v39  ;;  %2014 = vmatprep.subr.mxu1 %v2531_v27 }
 0x179   :  { %v487_v58 = vpop.f32.mrf.mxu0  ;;  %v2216_v20 = vpop.eup %2215  ;;  %1928 = vmatprep.mubr.f32.mxu1 %v2214_v17  ;;  %2015 = vmatpush3.msra.mxu1 %v2531_v27  ;;  %v1086_v17 = vmul.f32 %v2739_v26, %v2933_v30 }
 0x17a   :  { %v488_v59 = vadd.f32 %v2944_v39, %v487_v58  ;;  %1929 = vmatmul.mubr.f32.gmra.mxu1 %v2216_v20  ;;  %2016 = vmatprep.subr.mxu1 %v2537_v28  ;;  %v3001_v46 = vpop.permute.xlu1 %1052 }
 0x17b   :  { %2017 = vmatpush3.msra.mxu1 %v2537_v28  ;;  %v3003_v28 = vpop.permute.xlu0 %956 }
 0x17c   :  { %2221 = vtanh.f32 %v488_v59  ;;  %2018 = vmatprep.subr.mxu1 %v2551_v31 }
 0x17d   :  { %2223 = vtanh.f32 %v493_v57  ;;  %2019 = vmatpush3.msra.mxu1 %v2551_v31  ;;  %v1085_v31 = vmul.f32 %v2739_v26, %v2919_v22  ;;  %v1087_v57 = vmul.f32 %v2739_v26, %v2937_v36 }
 0x17e   :  { %2020 = vmatprep.subr.mxu1 %v2564_v34 }
 0x17f   :  { %v1883_v24 = vpop.f32.mrf.mxu0  ;;  %2021 = vmatpush3.msra.mxu1 %v2564_v34  ;;  %v989_v34 = vmul.f32 %v2734_v25, %v2921_v23  ;;  %v3018_v52 = vpop.permute.xlu0 %961 }
 0x180   :  { %v503_v63 = vadd.f32 %v1883_v24, %v2944_v39  ;;  %2022 = vmatprep.subr.mxu1 %v2570_v35 }
 0x181   :  { %v2218_v27 = vpop.eup %2217  ;;  %v497_v0 = vpop.f32.mrf.mxu0  ;;  %2023 = vmatpush3.msra.mxu1 %v2570_v35  ;;  %v1101_v23 = vadd.f32 %v1085_v31, %v989_v34 }
 0x182   :  { %v2220_v1 = vpop.eup %2219  ;;  %v498_v47 = vadd.f32 %v2944_v39, %v497_v0  ;;  %1931 = vmatprep.mubr.f32.mxu1 %v2218_v27  ;;  %2024 = vmatprep.subr.mxu1 %v2584_v38  ;;  %v3016_v35 = vpop.permute.xlu1 %1057  ;;  %v992_v27 = vmul.f32 %v2734_v25, %v2950_v50 }
 0x183   :  { %1932 = vmatmul.mubr.f32.gmra.mxu1 %v2220_v1  ;;  %v3038_v20 = vpop.permute.xlu0 %966  ;;  %v1117_v30 = vadd.f32 %v2757_v43, %v1101_v23  ;;  %v1089_v1 = vmul.f32 %v2739_v26, %v2954_v55  ;;  %v994_v55 = vmul.f32 %v2734_v25, %v2961_v61 }
 0x184   :  { %2225 = vtanh.f32 %v498_v47  ;;  %2025 = vmatpush3.msra.mxu1 %v2584_v38  ;;  %v993_v47 = vmul.f32 %v2734_v25, %v2956_v56 }
 0x185   :  { %2227 = vtanh.f32 %v503_v63  ;;  %2026 = vmatprep.subr.mxu1 %v2597_v41 }
 0x186   :  { %2027 = vmatpush3.msra.mxu1 %v2597_v41  ;;  %v3036_v58 = vpop.permute.xlu1 %1062 }
 0x187   :  { %v1886_v51 = vpop.f32.mrf.mxu0  ;;  %2028 = vmatprep.subr.mxu1 %v2603_v42  ;;  %v972_v50 = vpop.permute.xlu0 %971 }
 0x188   :  { %2029 = vmatpush3.msra.mxu1 %v2603_v42  ;;  %v513_v53 = vadd.f32 %v1886_v51, %v2944_v39  ;;  %v990_v42 = vmul.f32 %v2734_v25, %v2935_v33 }
 0x189   :  { %v2222_v38 = vpop.eup %2221  ;;  %v507_v54 = vpop.f32.mrf.mxu0  ;;  %2030 = vmatprep.subr.mxu1 %v2617_v45 }
 0x18a   :  { %v2224_v41 = vpop.eup %2223  ;;  %v508_v22 = vadd.f32 %v2944_v39, %v507_v54  ;;  %1934 = vmatprep.mubr.f32.mxu1 %v2222_v38  ;;  %2031 = vmatpush3.msra.mxu1 %v2617_v45  ;;  %v991_v45 = vmul.f32 %v2734_v25, %v2939_v37  ;;  %v1102_v33 = vadd.f32 %v1086_v17, %v990_v42  ;;  %v1068_v34 = vpop.permute.xlu1 %1067 }
 0x18b   :  { %1935 = vmatmul.mubr.f32.gmra.mxu1 %v2224_v41  ;;  %2032 = vmatprep.subr.mxu1 %v2630_v48  ;;  %v1090_v38 = vmul.f32 %v2739_v26, %v2959_v60  ;;  %v1091_v54 = vmul.f32 %v2739_v26, %v2966_v40  ;;  %v995_v41 = vmul.f32 %v2734_v25, %v2968_v44 }
 0x18c   :  { %2229 = vtanh.f32 %v508_v22  ;;  %2033 = vmatpush3.msra.mxu1 %v2630_v48  ;;  %v1088_v48 = vmul.f32 %v2739_v26, %v2948_v49  ;;  %v1103_v37 = vadd.f32 %v1087_v57, %v991_v45  ;;  %v1118_v49 = vadd.f32 %v2757_v43, %v1102_v33 }
 0x18d   :  { %2231 = vtanh.f32 %v513_v53  ;;  %2114 = vmatprep.subr.mxu1 %v2890_v12  ;;  %v1105_v53 = vadd.f32 %v1089_v1, %v993_v47  ;;  %v1092_v22 = vmul.f32 %v2739_v26, %v2978_v13  ;;  %v996_v60 = vmul.f32 %v2734_v25, %v2980_v14  ;;  %v977_v13 = vpop.permute.xlu0 %976 }
 0x18e   :  { %2233 = vtanh.f32 %v1117_v30  ;;  %v1104_v51 = vadd.f32 %v1088_v48, %v992_v27  ;;  %v1119_v56 = vadd.f32 %v2757_v43, %v1103_v37  ;;  %v1106_v17 = vadd.f32 %v1090_v38, %v994_v55  ;;  %v1073_v30 = vpop.permute.xlu1 %1072 }
 0x18f   :  { %v1889_v59 = vpop.f32.mrf.mxu0  ;;  %v1093_v42 = vmul.f32 %v2739_v26, %v2990_v21  ;;  %v997_v40 = vmul.f32 %v2734_v25, %v2992_v62  ;;  %v1121_v44 = vadd.f32 %v2757_v43, %v1105_v53  ;;  %v1107_v45 = vadd.f32 %v1091_v54, %v995_v41 }
 0x190   :  { %v523_v36 = vadd.f32 %v1889_v59, %v2944_v39  ;;  %v1120_v61 = vadd.f32 %v2757_v43, %v1104_v51  ;;  %v1108_v14 = vadd.f32 %v1092_v22, %v996_v60  ;;  %v1094_v59 = vmul.f32 %v2739_v26, %v3001_v46 }
 0x191   :  { %v2226_v24 = vpop.eup %2225  ;;  %v517_v63 = vpop.f32.mrf.mxu0  ;;  %v998_v33 = vmul.f32 %v2734_v25, %v3003_v28  ;;  %v1122_v21 = vadd.f32 %v2757_v43, %v1106_v17  ;;  %v1109_v62 = vadd.f32 %v1093_v42, %v997_v40  ;;  %v1095_v48 = vmul.f32 %v2739_v26, %v3016_v35 }
 0x192   :  { %v2228_v0 = vpop.eup %2227  ;;  %v518_v31 = vadd.f32 %v2944_v39, %v517_v63  ;;  %1937 = vmatprep.mubr.f32.mxu1 %v2226_v24  ;;  %v1123_v24 = vadd.f32 %v2757_v43, %v1107_v45  ;;  %v999_v27 = vmul.f32 %v2734_v25, %v3018_v52  ;;  %v1124_v63 = vadd.f32 %v2757_v43, %v1108_v14  ;;  %v982_v37 = vpop.permute.xlu0 %981 }
 0x193   :  { %1938 = vmatmul.mubr.f32.gmra.mxu1 %v2228_v0  ;;  %v1110_v46 = vadd.f32 %v1094_v59, %v998_v33  ;;  %v1078_v0 = vpop.permute.xlu1 %1077  ;;  %v1125_v1 = vadd.f32 %v2757_v43, %v1109_v62  ;;  %v1096_v47 = vmul.f32 %v2739_v26, %v3036_v58  ;;  %v1097_v52 = vmul.f32 %v2739_v26, %v1068_v34 }
 0x194   :  { %2235 = vtanh.f32 %v518_v31  ;;  %v1000_v31 = vmul.f32 %v2734_v25, %v3038_v20  ;;  %v1001_v51 = vmul.f32 %v2734_v25, %v972_v50  ;;  %v1098_v58 = vmul.f32 %v2739_v26, %v1073_v30 }
 0x195   :  { %2237 = vtanh.f32 %v523_v36  ;;  %v1126_v38 = vadd.f32 %v2757_v43, %v1110_v46  ;;  %v1002_v20 = vmul.f32 %v2734_v25, %v977_v13  ;;  %v1099_v34 = vmul.f32 %v2739_v26, %v1078_v0  ;;  %v80_v13 = vld [vmem:[%s3406_s8 + $0x40] sm:$0xff] }
 0x196   :  { %2239 = vtanh.f32 %v1118_v49  ;;  %v1111_v49 = vadd.f32 %v1095_v48, %v999_v27  ;;  %v1113_v54 = vadd.f32 %v1097_v52, %v1001_v51  ;;  %v1003_v50 = vmul.f32 %v2734_v25, %v982_v37  ;;  %v987_v22 = vpop.permute.xlu0 %986  ;;  %v75_v48 = vld [vmem:[%s3406_s8 + $0x18] sm:$0xff]  ;;  %v74_v27 = vld [vmem:[%s3406_s8 + $0x10] sm:$0xff]  ;;  %v72_v0 = vld [vmem:[%s3406_s8] sm:$0xff] }
 0x197   :  { %2241 = vtanh.f32 %v1119_v56  ;;  %v1112_v56 = vadd.f32 %v1096_v47, %v1000_v31  ;;  %v1083_v41 = vpop.permute.xlu1 %1082  ;;  %v1004_v42 = vmul.f32 %v2734_v25, %v987_v22 }
 0x198   :  { %2243 = vtanh.f32 %v1120_v61  ;;  %v1127_v53 = vadd.f32 %v2757_v43, %v1111_v49  ;;  %v1114_v61 = vadd.f32 %v1098_v58, %v1002_v20  ;;  %v1100_v17 = vmul.f32 %v2739_v26, %v1083_v41  ;;  %v81_v26 = vld [vmem:[%s3406_s8 + $0x48] sm:$0xff]  ;;  %v2366_v41 = vld [vmem:[%s3405_s6 + $0x70] sm:$0xff] }
 0x199   :  { %v2230_v23 = vpop.eup %2229  ;;  %2245 = vtanh.f32 %v1121_v44  ;;  %v1115_v44 = vadd.f32 %v1099_v34, %v1003_v50  ;;  %1958 = vmatprep.subr.mxu0 %v81_v26  ;;  %v2365_v34 = vld [vmem:[%s3405_s6 + $0x78] sm:$0xff] }
 0x19a   :  { %v2232_v57 = vpop.eup %2231  ;;  %1940 = vmatprep.mubr.f32.mxu1 %v2230_v23  ;;  %2247 = vtanh.f32 %v1122_v21  ;;  %v1128_v23 = vadd.f32 %v2757_v43, %v1112_v56  ;;  %v1130_v25 = vadd.f32 %v2757_v43, %v1114_v61  ;;  %1959 = vmatpush3.msra.mxu0 %v81_v26  ;;  %v2367_v61 = vld [vmem:[%s3405_s6 + $0x68] sm:$0xff] }
 0x19b   :  { %1941 = vmatmul.mubr.f32.gmra.mxu1 %v2232_v57  ;;  %v2234_v36 = vpop.eup %2233  ;;  %2249 = vtanh.f32 %v1123_v24  ;;  %v1129_v57 = vadd.f32 %v2757_v43, %v1113_v54  ;;  %1960 = vmatprep.subr.mxu0 %v80_v13  ;;  %v76_v24 = vld [vmem:[%s3406_s8 + $0x20] sm:$0xff] }
 0x19c   :  { %2251 = vtanh.f32 %v1124_v63  ;;  %1961 = vmatpush3.msra.mxu0 %v80_v13 }
 0x19d   :  { %2253 = vtanh.f32 %v1125_v1 }
 0x19e   :  { %2255 = vtanh.f32 %v1126_v38 }
 0x19f   :  { %2257 = vtanh.f32 %v1127_v53 }
 0x1a0   :  { %2259 = vtanh.f32 %v1128_v23 }
 0x1a1   :  { %v2236_v28 = vpop.eup %2235  ;;  %2261 = vtanh.f32 %v1129_v57  ;;  %v2369_v57 = vld [vmem:[%s3405_s6 + $0x58] sm:$0xff] }
 0x1a2   :  { %v2238_v35 = vpop.eup %2237  ;;  %1943 = vmatprep.mubr.f32.mxu1 %v2236_v28  ;;  %2263 = vtanh.f32 %v1130_v25 }
 0x1a3   :  { %1944 = vmatmul.mubr.f32.gmra.mxu1 %v2238_v35  ;;  %v2240_v55 = vpop.eup %2239 }
 0x1a4   :  { %2034 = vmatprep.mubr.f32.mxu1 %v2234_v36  ;;  %v2242_v60 = vpop.eup %2241 }
 0x1a5   :  { %v2244_v40 = vpop.eup %2243 }
 0x1a6   :  { %v2246_v45 = vpop.eup %2245 }
 0x1a7   :  { %2035 = vmatmul.mubr.f32.vlgmr.msra.gmra.mxu1 %v2240_v55  ;;  %v2248_v30 = vpop.eup %2247 }
 0x1a8   :  { %2037 = vmatprep.mubr.f32.mxu1 %v2242_v60  ;;  %2115 = vmatpush3.msra.mxu1 %v2890_v12  ;;  %v1116_v12 = vadd.f32 %v1100_v17, %v1004_v42  ;;  %v2250_v14 = vpop.eup %2249 }
 0x1a9   :  { %2116 = vmatprep.subr.mxu1 %v2895_v15  ;;  %v2252_v59 = vpop.eup %2251 }
 0x1aa   :  { %2117 = vmatpush3.msra.mxu1 %v2895_v15  ;;  %v1131_v15 = vadd.f32 %v2757_v43, %v1115_v44  ;;  %v1132_v33 = vadd.f32 %v2757_v43, %v1116_v12  ;;  %v2254_v21 = vpop.eup %2253  ;;  %v77_v43 = vld [vmem:[%s3406_s8 + $0x28] sm:$0xff] }
 0x1ab   :  { %2038 = vmatmul.mubr.f32.gmra.mxu1 %v2244_v40  ;;  %2118 = vmatprep.subr.mxu1 %v2902_v16  ;;  %v2256_v62 = vpop.eup %2255  ;;  %v2368_v40 = vld [vmem:[%s3405_s6 + $0x60] sm:$0xff] }
 0x1ac   :  { %2040 = vmatprep.mubr.f32.mxu1 %v2246_v45  ;;  %2119 = vmatpush3.msra.mxu1 %v2902_v16  ;;  %v79_v16 = vld [vmem:[%s3406_s8 + $0x38] sm:$0xff]  ;;  %2265 = vtanh.f32 %v1131_v15  ;;  %v2370_v45 = vld [vmem:[%s3405_s6 + $0x50] sm:$0xff] }
 0x1ad   :  { %2120 = vmatprep.subr.mxu1 %v2909_v18  ;;  %1962 = vmatprep.subr.mxu0 %v79_v16  ;;  %2267 = vtanh.f32 %v1132_v33 }
 0x1ae   :  { %2121 = vmatpush3.msra.mxu1 %v2909_v18  ;;  %1963 = vmatpush3.msra.mxu0 %v79_v16  ;;  %v78_v18 = vld [vmem:[%s3406_s8 + $0x30] sm:$0xff] }
 0x1af   :  { %2041 = vmatmul.mubr.f32.gmra.mxu1 %v2248_v30  ;;  %2122 = vmatprep.subr.mxu1 %v2916_v19 }
 0x1b0   :  { %2043 = vmatprep.mubr.f32.mxu1 %v2250_v14  ;;  %2123 = vmatpush3.msra.mxu1 %v2916_v19  ;;  %v2258_v19 = vpop.eup %2257 }
 0x1b1   :  { %1964 = vmatprep.subr.mxu0 %v78_v18  ;;  %2124 = vmatprep.subr.mxu1 %v2927_v29  ;;  %v2260_v36 = vpop.eup %2259 }
 0x1b2   :  { %1965 = vmatpush3.msra.mxu0 %v78_v18  ;;  %2125 = vmatpush3.msra.mxu1 %v2927_v29  ;;  %v2262_v63 = vpop.eup %2261  ;;  %v73_v29 = vld [vmem:[%s3406_s8 + $0x8] sm:$0xff] }
 0x1b3   :  { %2044 = vmatmul.mubr.f32.gmra.mxu1 %v2252_v59  ;;  %1966 = vmatprep.subr.mxu0 %v77_v43  ;;  %v2264_v46 = vpop.eup %2263 }
 0x1b4   :  { %2046 = vmatprep.mubr.f32.mxu1 %v2254_v21  ;;  %1967 = vmatpush3.msra.mxu0 %v77_v43 }
 0x1b5   :  { %1968 = vmatprep.subr.mxu0 %v76_v24  ;;  %2126 = vmatprep.subr.mxu1 %v81_v26 }
 0x1b6   :  { %1969 = vmatpush3.msra.mxu0 %v76_v24  ;;  %2127 = vmatpush3.msra.mxu1 %v81_v26 }
 0x1b7   :  { %2047 = vmatmul.mubr.f32.gmra.mxu1 %v2256_v62  ;;  %1970 = vmatprep.subr.mxu0 %v75_v48 }
 0x1b8   :  { %2049 = vmatprep.mubr.f32.mxu1 %v2258_v19  ;;  %1971 = vmatpush3.msra.mxu0 %v75_v48 }
 0x1b9   :  { %1972 = vmatprep.subr.mxu0 %v74_v27  ;;  %2128 = vmatprep.subr.mxu1 %v80_v13  ;;  %v2266_v37 = vpop.eup %2265 }
 0x1ba   :  { %1973 = vmatpush3.msra.mxu0 %v74_v27  ;;  %2129 = vmatpush3.msra.mxu1 %v80_v13  ;;  %v2268_v28 = vpop.eup %2267 }
 0x1bb   :  { %2050 = vmatmul.mubr.f32.gmra.mxu1 %v2260_v36  ;;  %1974 = vmatprep.subr.mxu0 %v73_v29 }
 0x1bc   :  { %2052 = vmatprep.mubr.f32.mxu1 %v2262_v63  ;;  %1975 = vmatpush3.msra.mxu0 %v73_v29 }
 0x1bd   :  { %1976 = vmatprep.subr.mxu0 %v72_v0  ;;  %2130 = vmatprep.subr.mxu1 %v79_v16 }
 0x1be   :  { %1977 = vmatpush3.msra.mxu0 %v72_v0  ;;  %2131 = vmatpush3.msra.mxu1 %v79_v16 }
 0x1bf   :  { %2053 = vmatmul.mubr.f32.gmra.mxu1 %v2264_v46  ;;  %2058 = vmatprep.subr.mxu0 %v2744_v32  ;;  %v3147_v32 = vld [vmem:[%s3408_s7] ss:$0 sm:$0xff] }
 0x1c0   :  { %2055 = vmatprep.mubr.f32.mxu1 %v2266_v37  ;;  %2132 = vmatprep.subr.mxu1 %v78_v18 }
 0x1c1   :  { %2133 = vmatpush3.msra.mxu1 %v78_v18 }
 0x1c2   :  { %2134 = vmatprep.subr.mxu1 %v77_v43 }
 0x1c3   :  { %2056 = vmatmul.mubr.f32.gmra.mxu1 %v2268_v28 }
 0x1c4   :  { %2135 = vmatpush3.msra.mxu1 %v77_v43 }
 0x1c5   :  { %2136 = vmatprep.subr.mxu1 %v76_v24 }
 0x1c6   :  { %2137 = vmatpush3.msra.mxu1 %v76_v24 }
 0x1c7   :  { %2138 = vmatprep.subr.mxu1 %v75_v48 }
 0x1c8   :  { %2139 = vmatpush3.msra.mxu1 %v75_v48 }
 0x1c9   :  { %2140 = vmatprep.subr.mxu1 %v74_v27 }
 0x1ca   :  { %2141 = vmatpush3.msra.mxu1 %v74_v27 }
 0x1cb   :  { %2142 = vmatprep.subr.mxu1 %v73_v29 }
 0x1cc   :  { %2143 = vmatpush3.msra.mxu1 %v73_v29 }
 0x1cd   :  { %2144 = vmatprep.subr.mxu1 %v72_v0 }
 0x1ce   :  { %2145 = vmatpush3.msra.mxu1 %v72_v0 }
 0x22c   :  { %v1924_v1 = vpop.f32.mrf.mxu1 }
 0x22d   :  { %v620_v47 = vadd.f32 %v1924_v1, %v3147_v32 }
 0x22e   :  { %v614_v31 = vpop.f32.mrf.mxu1 }
 0x22f   :  { %v615_v35 = vadd.f32 %v3147_v32, %v614_v31 }
 0x231   :  { %2269 = vtanh.f32 %v615_v35 }
 0x232   :  { %2271 = vtanh.f32 %v620_v47  ;;  %v1927_v49 = vpop.f32.mrf.mxu1 }
 0x233   :  { %v630_v52 = vadd.f32 %v1927_v49, %v3147_v32 }
 0x234   :  { %v624_v51 = vpop.f32.mrf.mxu1 }
 0x235   :  { %v625_v38 = vadd.f32 %v3147_v32, %v624_v51 }
 0x237   :  { %2273 = vtanh.f32 %v625_v38 }
 0x238   :  { %2275 = vtanh.f32 %v630_v52 }
 0x23a   :  { %v1930_v55 = vpop.f32.mrf.mxu1 }
 0x23b   :  { %v640_v56 = vadd.f32 %v1930_v55, %v3147_v32 }
 0x23c   :  { %v634_v58 = vpop.f32.mrf.mxu1 }
 0x23d   :  { %v635_v20 = vadd.f32 %v3147_v32, %v634_v58 }
 0x23e   :  { %v2270_v53 = vpop.eup %2269 }
 0x23f   :  { %v2272_v54 = vpop.eup %2271  ;;  %2277 = vtanh.f32 %v635_v20  ;;  %1978 = vmatprep.mubr.f32.mxu0 %v2270_v53 }
 0x240   :  { %2279 = vtanh.f32 %v640_v56  ;;  %1979 = vmatmul.mubr.f32.vlgmr.msra.gmra.mxu0 %v2272_v54 }
 0x241   :  { %2059 = vmatpush3.msra.mxu0 %v2365_v34 }
 0x242   :  { %2060 = vmatprep.subr.mxu0 %v2366_v41 }
 0x243   :  { %v1933_v50 = vpop.f32.mrf.mxu1  ;;  %2061 = vmatpush3.msra.mxu0 %v2366_v41 }
 0x244   :  { %v2274_v22 = vpop.eup %2273  ;;  %v650_v60 = vadd.f32 %v1933_v50, %v3147_v32  ;;  %2062 = vmatprep.subr.mxu0 %v2367_v61 }
 0x245   :  { %v644_v23 = vpop.f32.mrf.mxu1  ;;  %v2276_v17 = vpop.eup %2275  ;;  %1981 = vmatprep.mubr.f32.mxu0 %v2274_v22  ;;  %2063 = vmatpush3.msra.mxu0 %v2367_v61 }
 0x246   :  { %v645_v42 = vadd.f32 %v3147_v32, %v644_v23  ;;  %1982 = vmatmul.mubr.f32.gmra.mxu0 %v2276_v17  ;;  %2064 = vmatprep.subr.mxu0 %v2368_v40 }
 0x247   :  { %2065 = vmatpush3.msra.mxu0 %v2368_v40 }
 0x248   :  { %2281 = vtanh.f32 %v645_v42  ;;  %2066 = vmatprep.subr.mxu0 %v2369_v57 }
 0x249   :  { %2283 = vtanh.f32 %v650_v60  ;;  %2067 = vmatpush3.msra.mxu0 %v2369_v57 }
 0x24a   :  { %2068 = vmatprep.subr.mxu0 %v2370_v45 }
 0x24b   :  { %v1936_v44 = vpop.f32.mrf.mxu1  ;;  %2069 = vmatpush3.msra.mxu0 %v2370_v45 }
 0x24c   :  { %v2278_v26 = vpop.eup %2277  ;;  %v660_v25 = vadd.f32 %v1936_v44, %v3147_v32  ;;  %2070 = vmatprep.subr.mxu0 %v2819_v2 }
 0x24d   :  { %v654_v12 = vpop.f32.mrf.mxu1  ;;  %v2280_v30 = vpop.eup %2279  ;;  %1984 = vmatprep.mubr.f32.mxu0 %v2278_v26  ;;  %2071 = vmatpush3.msra.mxu0 %v2819_v2 }
 0x24e   :  { %v655_v15 = vadd.f32 %v3147_v32, %v654_v12  ;;  %1985 = vmatmul.mubr.f32.gmra.mxu0 %v2280_v30  ;;  %2072 = vmatprep.subr.mxu0 %v2826_v3 }
 0x24f   :  { %2073 = vmatpush3.msra.mxu0 %v2826_v3 }
 0x250   :  { %2285 = vtanh.f32 %v655_v15  ;;  %2074 = vmatprep.subr.mxu0 %v2833_v4 }
 0x251   :  { %2287 = vtanh.f32 %v660_v25  ;;  %2075 = vmatpush3.msra.mxu0 %v2833_v4 }
 0x252   :  { %2076 = vmatprep.subr.mxu0 %v2840_v5 }
 0x253   :  { %v1939_v13 = vpop.f32.mrf.mxu1  ;;  %2077 = vmatpush3.msra.mxu0 %v2840_v5 }
 0x254   :  { %v670_v16 = vadd.f32 %v1939_v13, %v3147_v32  ;;  %2078 = vmatprep.subr.mxu0 %v2847_v6 }
 0x255   :  { %v2282_v14 = vpop.eup %2281  ;;  %v664_v2 = vpop.f32.mrf.mxu1  ;;  %2079 = vmatpush3.msra.mxu0 %v2847_v6 }
 0x256   :  { %v2284_v59 = vpop.eup %2283  ;;  %v665_v33 = vadd.f32 %v3147_v32, %v664_v2  ;;  %1987 = vmatprep.mubr.f32.mxu0 %v2282_v14  ;;  %2080 = vmatprep.subr.mxu0 %v2854_v7 }
 0x257   :  { %1988 = vmatmul.mubr.f32.gmra.mxu0 %v2284_v59 }
 0x258   :  { %2289 = vtanh.f32 %v665_v33  ;;  %2081 = vmatpush3.msra.mxu0 %v2854_v7 }
 0x259   :  { %2291 = vtanh.f32 %v670_v16  ;;  %2082 = vmatprep.subr.mxu0 %v2861_v8 }
 0x25a   :  { %2083 = vmatpush3.msra.mxu0 %v2861_v8 }
 0x25b   :  { %v1942_v3 = vpop.f32.mrf.mxu1  ;;  %2084 = vmatprep.subr.mxu0 %v2866_v9 }
 0x25c   :  { %2085 = vmatpush3.msra.mxu0 %v2866_v9  ;;  %v680_v5 = vadd.f32 %v1942_v3, %v3147_v32 }
 0x25d   :  { %v2286_v4 = vpop.eup %2285  ;;  %v674_v6 = vpop.f32.mrf.mxu1  ;;  %2086 = vmatprep.subr.mxu0 %v2875_v10 }
 0x25e   :  { %v2288_v21 = vpop.eup %2287  ;;  %v675_v18 = vadd.f32 %v3147_v32, %v674_v6  ;;  %1990 = vmatprep.mubr.f32.mxu0 %v2286_v4  ;;  %2087 = vmatpush3.msra.mxu0 %v2875_v10 }
 0x25f   :  { %1991 = vmatmul.mubr.f32.gmra.mxu0 %v2288_v21  ;;  %2088 = vmatprep.subr.mxu0 %v2882_v11 }
 0x260   :  { %2293 = vtanh.f32 %v675_v18  ;;  %2089 = vmatpush3.msra.mxu0 %v2882_v11 }
 0x261   :  { %2295 = vtanh.f32 %v680_v5 }
 0x263   :  { %v1945_v7 = vpop.f32.mrf.mxu1 }
 0x264   :  { %v690_v9 = vadd.f32 %v1945_v7, %v3147_v32 }
 0x265   :  { %v2290_v8 = vpop.eup %2289  ;;  %v684_v43 = vpop.f32.mrf.mxu1 }
 0x266   :  { %v2292_v62 = vpop.eup %2291  ;;  %v685_v24 = vadd.f32 %v3147_v32, %v684_v43  ;;  %1993 = vmatprep.mubr.f32.mxu0 %v2290_v8 }
 0x267   :  { %1994 = vmatmul.mubr.f32.gmra.mxu0 %v2292_v62  ;;  %v2036_v19 = vpop.f32.mrf.mxu1 }
 0x268   :  { %2297 = vtanh.f32 %v685_v24  ;;  %v1221_v10 = vadd.f32 %v2036_v19, %v2944_v39 }
 0x269   :  { %2299 = vtanh.f32 %v690_v9  ;;  %v1215_v48 = vpop.f32.mrf.mxu1 }
 0x26a   :  { %v1216_v27 = vadd.f32 %v2944_v39, %v1215_v48 }
 0x26b   :  { %v2039_v11 = vpop.f32.mrf.mxu1 }
 0x26c   :  { %2301 = vtanh.f32 %v1216_v27  ;;  %v1231_v63 = vadd.f32 %v2039_v11, %v2944_v39 }
 0x26d   :  { %v2294_v36 = vpop.eup %2293  ;;  %2303 = vtanh.f32 %v1221_v10  ;;  %v1225_v29 = vpop.f32.mrf.mxu1 }
 0x26e   :  { %v2296_v46 = vpop.eup %2295  ;;  %v1226_v0 = vadd.f32 %v2944_v39, %v1225_v29  ;;  %1996 = vmatprep.mubr.f32.mxu0 %v2294_v36 }
 0x26f   :  { %1997 = vmatmul.mubr.f32.gmra.mxu0 %v2296_v46  ;;  %v2042_v37 = vpop.f32.mrf.mxu1 }
 0x270   :  { %2305 = vtanh.f32 %v1226_v0  ;;  %v1241_v28 = vadd.f32 %v2042_v37, %v2944_v39 }
 0x271   :  { %2307 = vtanh.f32 %v1231_v63  ;;  %v1235_v1 = vpop.f32.mrf.mxu1 }
 0x272   :  { %v1236_v47 = vadd.f32 %v2944_v39, %v1235_v1 }
 0x273   :  { %v2045_v31 = vpop.f32.mrf.mxu1 }
 0x274   :  { %2309 = vtanh.f32 %v1236_v47  ;;  %v1251_v49 = vadd.f32 %v2045_v31, %v2944_v39 }
 0x275   :  { %v2298_v35 = vpop.eup %2297  ;;  %2311 = vtanh.f32 %v1241_v28  ;;  %v1245_v52 = vpop.f32.mrf.mxu1 }
 0x276   :  { %v2300_v51 = vpop.eup %2299  ;;  %v1246_v38 = vadd.f32 %v2944_v39, %v1245_v52  ;;  %1999 = vmatprep.mubr.f32.mxu0 %v2298_v35 }
 0x277   :  { %2000 = vmatmul.mubr.f32.gmra.mxu0 %v2300_v51  ;;  %v2048_v55 = vpop.f32.mrf.mxu1 }
 0x278   :  { %2313 = vtanh.f32 %v1246_v38  ;;  %v1261_v58 = vadd.f32 %v2048_v55, %v2944_v39 }
 0x279   :  { %v2302_v56 = vpop.eup %2301  ;;  %2315 = vtanh.f32 %v1251_v49  ;;  %v1255_v20 = vpop.f32.mrf.mxu1 }
 0x27a   :  { %v2304_v53 = vpop.eup %2303  ;;  %v1256_v54 = vadd.f32 %v2944_v39, %v1255_v20  ;;  %2090 = vmatprep.mubr.f32.mxu0 %v2302_v56 }
 0x27b   :  { %v2051_v34 = vpop.f32.mrf.mxu1  ;;  %2091 = vmatmul.mubr.f32.vlgmr.msra.gmra.mxu0 %v2304_v53 }
 0x27c   :  { %2317 = vtanh.f32 %v1256_v54  ;;  %v1271_v41 = vadd.f32 %v2051_v34, %v2944_v39 }
 0x27d   :  { %v2306_v50 = vpop.eup %2305  ;;  %2319 = vtanh.f32 %v1261_v58  ;;  %v1265_v22 = vpop.f32.mrf.mxu1 }
 0x27e   :  { %v2308_v60 = vpop.eup %2307  ;;  %v1266_v23 = vadd.f32 %v2944_v39, %v1265_v22  ;;  %2093 = vmatprep.mubr.f32.mxu0 %v2306_v50 }
 0x27f   :  { %v2054_v61 = vpop.f32.mrf.mxu1  ;;  %2094 = vmatmul.mubr.f32.gmra.mxu0 %v2308_v60 }
 0x280   :  { %2321 = vtanh.f32 %v1266_v23  ;;  %v1281_v42 = vadd.f32 %v2054_v61, %v2944_v39 }
 0x281   :  { %v2310_v17 = vpop.eup %2309  ;;  %2323 = vtanh.f32 %v1271_v41  ;;  %v1275_v40 = vpop.f32.mrf.mxu1 }
 0x282   :  { %v2312_v57 = vpop.eup %2311  ;;  %v1276_v44 = vadd.f32 %v2944_v39, %v1275_v40  ;;  %2096 = vmatprep.mubr.f32.mxu0 %v2310_v17 }
 0x283   :  { %v2057_v45 = vpop.f32.mrf.mxu1  ;;  %2097 = vmatmul.mubr.f32.gmra.mxu0 %v2312_v57 }
 0x284   :  { %2325 = vtanh.f32 %v1276_v44  ;;  %v1291_v25 = vadd.f32 %v2057_v45, %v2944_v39 }
 0x285   :  { %v2314_v26 = vpop.eup %2313  ;;  %2327 = vtanh.f32 %v1281_v42  ;;  %v1285_v12 = vpop.f32.mrf.mxu1 }
 0x286   :  { %v2316_v30 = vpop.eup %2315  ;;  %v1286_v15 = vadd.f32 %v2944_v39, %v1285_v12  ;;  %2099 = vmatprep.mubr.f32.mxu0 %v2314_v26  ;;  %v3222_v39 = vld [vmem:[%s3409_s9] ss:$0 sm:$0xff] }
 0x287   :  { %2100 = vmatmul.mubr.f32.gmra.mxu0 %v2316_v30 }
 0x288   :  { %2329 = vtanh.f32 %v1286_v15 }
 0x289   :  { %v2318_v13 = vpop.eup %2317  ;;  %2331 = vtanh.f32 %v1291_v25 }
 0x28a   :  { %v2320_v14 = vpop.eup %2319  ;;  %2102 = vmatprep.mubr.f32.mxu0 %v2318_v13 }
 0x28b   :  { %2103 = vmatmul.mubr.f32.gmra.mxu0 %v2320_v14 }
 0x28d   :  { %v2322_v16 = vpop.eup %2321 }
 0x28e   :  { %v2324_v2 = vpop.eup %2323  ;;  %2105 = vmatprep.mubr.f32.mxu0 %v2322_v16 }
 0x28f   :  { %2106 = vmatmul.mubr.f32.gmra.mxu0 %v2324_v2 }
 0x291   :  { %v2326_v59 = vpop.eup %2325 }
 0x292   :  { %v2328_v33 = vpop.eup %2327  ;;  %2108 = vmatprep.mubr.f32.mxu0 %v2326_v59 }
 0x293   :  { %2109 = vmatmul.mubr.f32.gmra.mxu0 %v2328_v33 }
 0x295   :  { %v2330_v3 = vpop.eup %2329 }
 0x296   :  { %v2332_v4 = vpop.eup %2331  ;;  %2111 = vmatprep.mubr.f32.mxu0 %v2330_v3 }
 0x297   :  { %2112 = vmatmul.mubr.f32.gmra.mxu0 %v2332_v4 }
 0x300   :  { %v1980_v5 = vpop.f32.mrf.mxu0 }
 0x301   :  { %v787_v6 = vadd.f32 %v1980_v5, %v3222_v39 }
 0x302   :  { %v781_v21 = vpop.f32.mrf.mxu0 }
 0x303   :  { %862 = vst.msk [vmem:[%s3410_s10 + $0x8] sm:$0xff] %vm860_vm0, %v787_v6  ;;  %v782_v18 = vadd.f32 %v3222_v39, %v781_v21 }
 0x305   :  { %861 = vst.msk [vmem:[%s3410_s10] sm:$0xff] %vm860_vm0, %v782_v18 }
 0x306   :  { %v1983_v7 = vpop.f32.mrf.mxu0 }
 0x307   :  { %v797_v8 = vadd.f32 %v1983_v7, %v3222_v39 }
 0x308   :  { %v791_v9 = vpop.f32.mrf.mxu0 }
 0x309   :  { %864 = vst.msk [vmem:[%s3410_s10 + $0x18] sm:$0xff] %vm860_vm0, %v797_v8  ;;  %v792_v43 = vadd.f32 %v3222_v39, %v791_v9 }
 0x30b   :  { %863 = vst.msk [vmem:[%s3410_s10 + $0x10] sm:$0xff] %vm860_vm0, %v792_v43 }
 0x30e   :  { %v1986_v62 = vpop.f32.mrf.mxu0 }
 0x30f   :  { %v807_v24 = vadd.f32 %v1986_v62, %v3222_v39 }
 0x310   :  { %v801_v19 = vpop.f32.mrf.mxu0 }
 0x311   :  { %866 = vst.msk [vmem:[%s3410_s10 + $0x28] sm:$0xff] %vm860_vm0, %v807_v24  ;;  %v802_v10 = vadd.f32 %v3222_v39, %v801_v19 }
 0x313   :  { %865 = vst.msk [vmem:[%s3410_s10 + $0x20] sm:$0xff] %vm860_vm0, %v802_v10 }
 0x317   :  { %v1989_v48 = vpop.f32.mrf.mxu0 }
 0x318   :  { %v817_v27 = vadd.f32 %v1989_v48, %v3222_v39 }
 0x319   :  { %v811_v11 = vpop.f32.mrf.mxu0 }
 0x31a   :  { %868 = vst.msk [vmem:[%s3410_s10 + $0x38] sm:$0xff] %vm860_vm0, %v817_v27  ;;  %v812_v36 = vadd.f32 %v3222_v39, %v811_v11 }
 0x31c   :  { %867 = vst.msk [vmem:[%s3410_s10 + $0x30] sm:$0xff] %vm860_vm0, %v812_v36 }
 0x31f   :  { %v1992_v63 = vpop.f32.mrf.mxu0 }
 0x320   :  { %v827_v29 = vadd.f32 %v1992_v63, %v3222_v39 }
 0x321   :  { %v821_v46 = vpop.f32.mrf.mxu0 }
 0x322   :  { %870 = vst.msk [vmem:[%s3410_s10 + $0x48] sm:$0xff] %vm860_vm0, %v827_v29  ;;  %v822_v0 = vadd.f32 %v3222_v39, %v821_v46 }
 0x324   :  { %869 = vst.msk [vmem:[%s3410_s10 + $0x40] sm:$0xff] %vm860_vm0, %v822_v0 }
 0x327   :  { %v1995_v37 = vpop.f32.mrf.mxu0 }
 0x328   :  { %v837_v28 = vadd.f32 %v1995_v37, %v3222_v39 }
 0x329   :  { %v831_v1 = vpop.f32.mrf.mxu0 }
 0x32a   :  { %872 = vst.msk [vmem:[%s3410_s10 + $0x58] sm:$0xff] %vm860_vm0, %v837_v28  ;;  %v832_v47 = vadd.f32 %v3222_v39, %v831_v1 }
 0x32c   :  { %871 = vst.msk [vmem:[%s3410_s10 + $0x50] sm:$0xff] %vm860_vm0, %v832_v47 }
 0x32f   :  { %v1998_v31 = vpop.f32.mrf.mxu0 }
 0x330   :  { %v847_v35 = vadd.f32 %v1998_v31, %v3222_v39 }
 0x331   :  { %v841_v49 = vpop.f32.mrf.mxu0 }
 0x332   :  { %874 = vst.msk [vmem:[%s3410_s10 + $0x68] sm:$0xff] %vm860_vm0, %v847_v35  ;;  %v842_v52 = vadd.f32 %v3222_v39, %v841_v49 }
 0x334   :  { %873 = vst.msk [vmem:[%s3410_s10 + $0x60] sm:$0xff] %vm860_vm0, %v842_v52 }
 0x337   :  { %v2001_v51 = vpop.f32.mrf.mxu0 }
 0x338   :  { %v857_v38 = vadd.f32 %v2001_v51, %v3222_v39 }
 0x339   :  { %v851_v55 = vpop.f32.mrf.mxu0 }
 0x33a   :  { %876 = vst.msk [vmem:[%s3410_s10 + $0x78] sm:$0xff] %vm860_vm0, %v857_v38  ;;  %v852_v56 = vadd.f32 %v3222_v39, %v851_v55 }
 0x33b   :  { %v2092_v58 = vpop.f32.mrf.mxu0 }
 0x33c   :  { %875 = vst.msk [vmem:[%s3410_s10 + $0x70] sm:$0xff] %vm860_vm0, %v852_v56  ;;  %v1382_v20 = vadd.f32 %v2092_v58, %v3147_v32 }
 0x33d   :  { %v1376_v53 = vpop.f32.mrf.mxu0 }
 0x33e   :  { %v1377_v54 = vadd.f32 %v3147_v32, %v1376_v53 }
 0x33f   :  { %v2095_v34 = vpop.f32.mrf.mxu0 }
 0x340   :  { %2333 = vtanh.f32 %v1377_v54  ;;  %v1392_v50 = vadd.f32 %v2095_v34, %v3147_v32 }
 0x341   :  { %2335 = vtanh.f32 %v1382_v20  ;;  %v1386_v41 = vpop.f32.mrf.mxu0 }
 0x342   :  { %v1387_v22 = vadd.f32 %v3147_v32, %v1386_v41 }
 0x343   :  { %v2098_v60 = vpop.f32.mrf.mxu0 }
 0x344   :  { %2337 = vtanh.f32 %v1387_v22  ;;  %v1402_v23 = vadd.f32 %v2098_v60, %v3147_v32 }
 0x345   :  { %2339 = vtanh.f32 %v1392_v50  ;;  %v1396_v61 = vpop.f32.mrf.mxu0 }
 0x346   :  { %v1397_v17 = vadd.f32 %v3147_v32, %v1396_v61 }
 0x347   :  { %v2101_v42 = vpop.f32.mrf.mxu0 }
 0x348   :  { %2341 = vtanh.f32 %v1397_v17  ;;  %v1412_v40 = vadd.f32 %v2101_v42, %v3147_v32 }
 0x349   :  { %2343 = vtanh.f32 %v1402_v23  ;;  %v1406_v57 = vpop.f32.mrf.mxu0 }
 0x34a   :  { %v1407_v44 = vadd.f32 %v3147_v32, %v1406_v57 }
 0x34b   :  { %v2104_v45 = vpop.f32.mrf.mxu0 }
 0x34c   :  { %2345 = vtanh.f32 %v1407_v44  ;;  %v1422_v25 = vadd.f32 %v2104_v45, %v3147_v32 }
 0x34d   :  { %v2334_v26 = vpop.eup %2333  ;;  %2347 = vtanh.f32 %v1412_v40  ;;  %v1416_v12 = vpop.f32.mrf.mxu0 }
 0x34e   :  { %v2336_v30 = vpop.eup %2335  ;;  %v1417_v15 = vadd.f32 %v3147_v32, %v1416_v12  ;;  %2146 = vmatprep.mubr.f32.mxu1 %v2334_v26 }
 0x34f   :  { %v2107_v13 = vpop.f32.mrf.mxu0  ;;  %2147 = vmatmul.mubr.f32.vlgmr.msra.gmra.mxu1 %v2336_v30 }
 0x350   :  { %2349 = vtanh.f32 %v1417_v15  ;;  %v1432_v16 = vadd.f32 %v2107_v13, %v3147_v32 }
 0x351   :  { %v2338_v14 = vpop.eup %2337  ;;  %2351 = vtanh.f32 %v1422_v25  ;;  %v1426_v2 = vpop.f32.mrf.mxu0 }
 0x352   :  { %v2340_v59 = vpop.eup %2339  ;;  %v1427_v33 = vadd.f32 %v3147_v32, %v1426_v2  ;;  %2149 = vmatprep.mubr.f32.mxu1 %v2338_v14 }
 0x353   :  { %v2110_v3 = vpop.f32.mrf.mxu0  ;;  %2150 = vmatmul.mubr.f32.gmra.mxu1 %v2340_v59 }
 0x354   :  { %2353 = vtanh.f32 %v1427_v33  ;;  %v1442_v5 = vadd.f32 %v2110_v3, %v3147_v32 }
 0x355   :  { %v2342_v4 = vpop.eup %2341  ;;  %2355 = vtanh.f32 %v1432_v16  ;;  %v1436_v6 = vpop.f32.mrf.mxu0 }
 0x356   :  { %v2344_v21 = vpop.eup %2343  ;;  %v1437_v18 = vadd.f32 %v3147_v32, %v1436_v6  ;;  %2152 = vmatprep.mubr.f32.mxu1 %v2342_v4 }
 0x357   :  { %v2113_v7 = vpop.f32.mrf.mxu0  ;;  %2153 = vmatmul.mubr.f32.gmra.mxu1 %v2344_v21 }
 0x358   :  { %2357 = vtanh.f32 %v1437_v18  ;;  %v1452_v9 = vadd.f32 %v2113_v7, %v3147_v32 }
 0x359   :  { %v2346_v8 = vpop.eup %2345  ;;  %2359 = vtanh.f32 %v1442_v5  ;;  %v1446_v43 = vpop.f32.mrf.mxu0 }
 0x35a   :  { %v2348_v62 = vpop.eup %2347  ;;  %v1447_v24 = vadd.f32 %v3147_v32, %v1446_v43  ;;  %2155 = vmatprep.mubr.f32.mxu1 %v2346_v8 }
 0x35b   :  { %2156 = vmatmul.mubr.f32.gmra.mxu1 %v2348_v62 }
 0x35c   :  { %2361 = vtanh.f32 %v1447_v24 }
 0x35d   :  { %v2350_v19 = vpop.eup %2349  ;;  %2363 = vtanh.f32 %v1452_v9 }
 0x35e   :  { %v2352_v10 = vpop.eup %2351  ;;  %2158 = vmatprep.mubr.f32.mxu1 %v2350_v19 }
 0x35f   :  { %2159 = vmatmul.mubr.f32.gmra.mxu1 %v2352_v10 }
 0x361   :  { %v2354_v48 = vpop.eup %2353 }
 0x362   :  { %v2356_v27 = vpop.eup %2355  ;;  %2161 = vmatprep.mubr.f32.mxu1 %v2354_v48 }
 0x363   :  { %2162 = vmatmul.mubr.f32.gmra.mxu1 %v2356_v27 }
 0x365   :  { %v2358_v11 = vpop.eup %2357 }
 0x366   :  { %v2360_v36 = vpop.eup %2359  ;;  %2164 = vmatprep.mubr.f32.mxu1 %v2358_v11 }
 0x367   :  { %2165 = vmatmul.mubr.f32.gmra.mxu1 %v2360_v36 }
 0x369   :  { %v2362_v63 = vpop.eup %2361 }
 0x36a   :  { %v2364_v29 = vpop.eup %2363  ;;  %2167 = vmatprep.mubr.f32.mxu1 %v2362_v63 }
 0x36b   :  { %2168 = vmatmul.mubr.f32.gmra.mxu1 %v2364_v29 }
 0x40f   :  { %v2148_v32 = vpop.f32.mrf.mxu1 }
 0x410   :  { %v1543_v46 = vadd.f32 %v2148_v32, %v3222_v39 }
 0x411   :  { %v1537_v0 = vpop.f32.mrf.mxu1 }
 0x412   :  { %1617 = vst.msk [vmem:[%s3410_s10 + $0x88] sm:$0xff] %vm860_vm0, %v1543_v46  ;;  %v1538_v37 = vadd.f32 %v3222_v39, %v1537_v0 }
 0x413   :  { %v2151_v28 = vpop.f32.mrf.mxu1 }
 0x414   :  { %1616 = vst.msk [vmem:[%s3410_s10 + $0x80] sm:$0xff] %vm860_vm0, %v1538_v37  ;;  %v1553_v1 = vadd.f32 %v2151_v28, %v3222_v39 }
 0x415   :  { %v1547_v47 = vpop.f32.mrf.mxu1 }
 0x416   :  { %1619 = vst.msk [vmem:[%s3410_s10 + $0x98] sm:$0xff] %vm860_vm0, %v1553_v1  ;;  %v1548_v31 = vadd.f32 %v3222_v39, %v1547_v47 }
 0x417   :  { %v2154_v35 = vpop.f32.mrf.mxu1 }
 0x418   :  { %1618 = vst.msk [vmem:[%s3410_s10 + $0x90] sm:$0xff] %vm860_vm0, %v1548_v31  ;;  %v1563_v49 = vadd.f32 %v2154_v35, %v3222_v39 }
 0x419   :  { %v1557_v52 = vpop.f32.mrf.mxu1 }
 0x41a   :  { %1621 = vst.msk [vmem:[%s3410_s10 + $0xa8] sm:$0xff] %vm860_vm0, %v1563_v49  ;;  %v1558_v51 = vadd.f32 %v3222_v39, %v1557_v52 }
 0x41b   :  { %v2157_v38 = vpop.f32.mrf.mxu1 }
 0x41c   :  { %1620 = vst.msk [vmem:[%s3410_s10 + $0xa0] sm:$0xff] %vm860_vm0, %v1558_v51  ;;  %v1573_v55 = vadd.f32 %v2157_v38, %v3222_v39 }
 0x41d   :  { %v1567_v56 = vpop.f32.mrf.mxu1 }
 0x41e   :  { %1623 = vst.msk [vmem:[%s3410_s10 + $0xb8] sm:$0xff] %vm860_vm0, %v1573_v55  ;;  %v1568_v58 = vadd.f32 %v3222_v39, %v1567_v56 }
 0x41f   :  { %v2160_v20 = vpop.f32.mrf.mxu1 }
 0x420   :  { %1622 = vst.msk [vmem:[%s3410_s10 + $0xb0] sm:$0xff] %vm860_vm0, %v1568_v58  ;;  %v1583_v53 = vadd.f32 %v2160_v20, %v3222_v39 }
 0x421   :  { %v1577_v54 = vpop.f32.mrf.mxu1 }
 0x422   :  { %1625 = vst.msk [vmem:[%s3410_s10 + $0xc8] sm:$0xff] %vm860_vm0, %v1583_v53  ;;  %v1578_v34 = vadd.f32 %v3222_v39, %v1577_v54 }
 0x423   :  { %v2163_v50 = vpop.f32.mrf.mxu1 }
 0x424   :  { %1624 = vst.msk [vmem:[%s3410_s10 + $0xc0] sm:$0xff] %vm860_vm0, %v1578_v34  ;;  %v1593_v41 = vadd.f32 %v2163_v50, %v3222_v39 }
 0x425   :  { %v1587_v22 = vpop.f32.mrf.mxu1 }
 0x426   :  { %1627 = vst.msk [vmem:[%s3410_s10 + $0xd8] sm:$0xff] %vm860_vm0, %v1593_v41  ;;  %v1588_v60 = vadd.f32 %v3222_v39, %v1587_v22 }
 0x427   :  { %v2166_v23 = vpop.f32.mrf.mxu1 }
 0x428   :  { %1626 = vst.msk [vmem:[%s3410_s10 + $0xd0] sm:$0xff] %vm860_vm0, %v1588_v60  ;;  %v1603_v61 = vadd.f32 %v2166_v23, %v3222_v39 }
 0x429   :  { %v1597_v17 = vpop.f32.mrf.mxu1 }
 0x42a   :  { %1629 = vst.msk [vmem:[%s3410_s10 + $0xe8] sm:$0xff] %vm860_vm0, %v1603_v61  ;;  %v1598_v42 = vadd.f32 %v3222_v39, %v1597_v17 }
 0x42b   :  { %v2169_v40 = vpop.f32.mrf.mxu1 }
 0x42c   :  { %1628 = vst.msk [vmem:[%s3410_s10 + $0xe0] sm:$0xff] %vm860_vm0, %v1598_v42  ;;  %v1613_v57 = vadd.f32 %v2169_v40, %v3222_v39 }
 0x42d   :  { %v1607_v44 = vpop.f32.mrf.mxu1 }
 0x42e   :  { %1631 = vst.msk [vmem:[%s3410_s10 + $0xf8] sm:$0xff] %vm860_vm0, %v1613_v57  ;;  %v1608_v45 = vadd.f32 %v3222_v39, %v1607_v44 }
 0x430   :  { %1630 = vst.msk [vmem:[%s3410_s10 + $0xf0] sm:$0xff] %vm860_vm0, %v1608_v45 }

</bundles_post_ra>
